<compile_context>
chip_gen: v6e
topology: v6e:2x2x1
jax: 0.10.0
libtpu: 0.0.40
codegen_flags: <defaults>
</compile_context>

<pallas_src>
import jax
import jax.numpy as jnp
from jax.experimental import pallas as pl
from jax.experimental.pallas import tpu as pltpu

D_MODEL = 32
N_HEADS = 4
D_HEAD = D_MODEL // N_HEADS
D_FF = 64
CONTENT_DIM = 32
N_ENC_LAYERS = 1
N_DEC_LAYERS = 1
LANES = 128
_NEG = -1e30


# ----------------------------------------------------------------------------
# Host-side helpers
# ----------------------------------------------------------------------------

def positional_encoding(L, d):
    pos = jnp.arange(L, dtype=jnp.float32)[:, None]
    i = jnp.arange(d // 2, dtype=jnp.float32)[None, :]
    ang = pos / jnp.power(10000.0, 2.0 * i / d)
    pe = jnp.zeros((L, d), jnp.float32)
    pe = pe.at[:, 0::2].set(jnp.sin(ang))
    pe = pe.at[:, 1::2].set(jnp.cos(ang))
    return pe  # (L, d)


class _SlabPacker:
    """Packs many small arrays into one (rows, 128) lane-dense slab (one DMA).

    Every entry is sublane-aligned (row start a multiple of 8) so in-kernel
    static `pl.ds` views are cheap aligned loads."""

    def __init__(self, dtype):
        self.dtype = dtype
        self.blocks = []
        self.index = {}   # name -> (row_start, rows, cols)
        self.rows = 0

    def add(self, name, arr):
        arr = jnp.asarray(arr, jnp.float32)
        if arr.ndim == 1:
            arr = arr[None, :]
        r, c = arr.shape
        assert c <= LANES, (name, arr.shape)
        pad = (-self.rows) % 8
        if pad:
            self.blocks.append(jnp.zeros((pad, LANES), self.dtype))
            self.rows += pad
        blk = jnp.zeros((r, LANES), self.dtype).at[:, :c].set(
            arr.astype(self.dtype))
        self.blocks.append(blk)
        self.index[name] = (self.rows, r, c)
        self.rows += r

    def finalize(self):
        pad = (-self.rows) % 8
        if pad:
            self.blocks.append(jnp.zeros((pad, LANES), self.dtype))
            self.rows += pad
        return jnp.concatenate(self.blocks, axis=0), dict(self.index)


def _reader(ref, index):
    """Kernel-side: static views into a packed slab ref."""
    def get(name, dtype=None):
        r0, rows, cols = index[name]
        v = ref[pl.ds(r0, rows), pl.ds(0, cols)]
        return v if dtype is None else v.astype(dtype)
    return get


# ----------------------------------------------------------------------------
# In-kernel building blocks (values live in vregs; f32 VPU math, bf16 MXU ops)
# ----------------------------------------------------------------------------

def _layer_norm(x, g, b):
    mu = jnp.mean(x, axis=-1, keepdims=True)
    var = jnp.mean((x - mu) ** 2, axis=-1, keepdims=True)
    return (x - mu) * jax.lax.rsqrt(var + 1e-5) * g + b


def _mha(wa, xq, xkv, bias, head_masks):
    """Multi-head attention on batch-major slabs with a fused QKV projection.

    Heads are separated with hoisted lane masks: (Q*m_h) @ K^T contracts only
    over head h's 8 feature lanes and P @ (V*m_h) writes only head h's output
    lanes, so the per-head results sum directly into the merged output —
    no per-head transposes or concatenations."""
    bf16 = jnp.bfloat16
    qkv_q = jnp.dot(xq.astype(bf16), wa["wqkv"],
                    preferred_element_type=jnp.float32) + wa["bqkv"]
    if xq is xkv:                       # self-attention: one projection push
        qkv_k = qkv_q
    else:                               # cross-attention
        qkv_k = jnp.dot(xkv.astype(bf16), wa["wqkv"],
                        preferred_element_type=jnp.float32) + wa["bqkv"]
    scale = 1.0 / (D_HEAD ** 0.5)
    q16 = (qkv_q[:, 0:D_MODEL] * scale).astype(bf16)          # scale folded once
    k16 = qkv_k[:, D_MODEL:2 * D_MODEL].astype(bf16)
    v16 = qkv_k[:, 2 * D_MODEL:3 * D_MODEL].astype(bf16)
    acc = None
    for m_h in head_masks:              # unrolled over 4 heads
        s = jax.lax.dot_general(q16 * m_h, k16, (((1,), (1,)), ((), ())),
                                preferred_element_type=jnp.float32) + bias
        s = s - jnp.max(s, axis=-1, keepdims=True)
        p = jnp.exp(s)
        p = p * pl.reciprocal(jnp.sum(p, axis=-1, keepdims=True), approx=True)
        o_h = jnp.dot(p.astype(bf16), v16 * m_h,
                      preferred_element_type=jnp.float32)
        acc = o_h if acc is None else acc + o_h
    return jnp.dot(acc.astype(bf16), wa["wo"],
                   preferred_element_type=jnp.float32) + wa["bo"]


def _ffn(wf, x):
    bf16 = jnp.bfloat16
    h = jnp.dot(x.astype(bf16), wf["w1"],
                preferred_element_type=jnp.float32) + wf["b1"]
    h = jnp.maximum(h, 0.0)
    return jnp.dot(h.astype(bf16), wf["w2"],
                   preferred_element_type=jnp.float32) + wf["b2"]


# ----------------------------------------------------------------------------
# Fused whole-model forward
# ----------------------------------------------------------------------------

def transformer_forward(params, src, content, tgt):
    """Mirrors Transformer.forward (use_sbert=False, teacher-forced decoder)."""
    B, IN_LEN = src.shape
    OUT_LEN = tgt.shape[1]
    Me = B * IN_LEN    # encoder rows (batch-major)
    Md = B * OUT_LEN   # decoder rows (batch-major)
    assert Me % 8 == 0 and Md % 8 == 0, "batch-major rows must be 8-aligned"
    f32 = jnp.float32

    # ------------- pack per-call data into ONE lane-dense f32 slab ----------
    dp = _SlabPacker(jnp.float32)
    dp.add("src", jnp.broadcast_to(src.reshape(Me, 1).astype(f32), (Me, D_MODEL)))
    dp.add("tgt", jnp.broadcast_to(tgt.reshape(Md, 1).astype(f32), (Md, D_MODEL)))
    # content repeated per output position (pure data movement; the projection
    # matmul stays in-kernel) — replaces the old iota/floor selection matmul.
    dp.add("content", jnp.repeat(content.astype(f32), OUT_LEN, axis=0))
    dp.add("pe_enc", jnp.tile(positional_encoding(IN_LEN, D_MODEL), (B, 1)))
    dp.add("pe_dec", jnp.tile(positional_encoding(OUT_LEN, D_MODEL), (B, 1)))
    bid_enc = jnp.repeat(jnp.arange(B, dtype=f32), IN_LEN)
    bid_dec = jnp.repeat(jnp.arange(B, dtype=f32), OUT_LEN)
    dp.add("bid_enc_col", bid_enc.reshape(Me, 1))
    dp.add("bid_enc_row", bid_enc.reshape(1, Me))
    dp.add("bid_dec_col", bid_dec.reshape(Md, 1))
    dp.add("bid_dec_row", bid_dec.reshape(1, Md))
    data_slab, d_idx = dp.finalize()

    # ------------- pack every parameter into ONE bf16 slab ------------------
    wp = _SlabPacker(jnp.bfloat16)
    enc, dec = params["enc"], params["dec"]

    def add_attn(prefix, a):
        wp.add(prefix + "_wqkv", a["wqkv"]); wp.add(prefix + "_bqkv", a["bqkv"])
        wp.add(prefix + "_wo", a["wo"]);     wp.add(prefix + "_bo", a["bo"])

    def add_ffn(prefix, fd):
        wp.add(prefix + "_w1", fd["w1"]); wp.add(prefix + "_b1", fd["b1"])
        wp.add(prefix + "_w2", fd["w2"]); wp.add(prefix + "_b2", fd["b2"])

    def add_ln(prefix, l):
        wp.add(prefix + "_g", l["g"]); wp.add(prefix + "_b", l["b"])

    wp.add("enc_in_w", enc["in_w"]);       wp.add("enc_in_b", enc["in_b"])
    wp.add("content_w", enc["content_w"]); wp.add("content_b", enc["content_b"])
    for i, lp in enumerate(enc["layers"]):
        add_attn(f"enc{i}_attn", lp["attn"]); add_ffn(f"enc{i}_ffn", lp["ffn"])
        add_ln(f"enc{i}_ln1", lp["ln1"]);     add_ln(f"enc{i}_ln2", lp["ln2"])
    wp.add("dec_in_w", dec["in_w"]);   wp.add("dec_in_b", dec["in_b"])
    wp.add("dec_out_w", dec["out_w"]); wp.add("dec_out_b", dec["out_b"])
    for i, lp in enumerate(dec["layers"]):
        add_attn(f"dec{i}_self", lp["self_attn"])
        add_attn(f"dec{i}_cross", lp["cross_attn"])
        add_ffn(f"dec{i}_ffn", lp["ffn"])
        add_ln(f"dec{i}_ln1", lp["ln1"]); add_ln(f"dec{i}_ln2", lp["ln2"])
        add_ln(f"dec{i}_ln3", lp["ln3"])
    param_slab, w_idx = wp.finalize()

    n_enc_layers = len(enc["layers"])
    n_dec_layers = len(dec["layers"])

    def kernel(data_ref, w_ref, out_ref):
        dget = _reader(data_ref, d_idx)
        wget = _reader(w_ref, w_idx)

        def attn_p(prefix):
            return dict(wqkv=wget(prefix + "_wqkv"),
                        bqkv=wget(prefix + "_bqkv", f32),
                        wo=wget(prefix + "_wo"),
                        bo=wget(prefix + "_bo", f32))

        def ffn_p(prefix):
            return dict(w1=wget(prefix + "_w1"), b1=wget(prefix + "_b1", f32),
                        w2=wget(prefix + "_w2"), b2=wget(prefix + "_b2", f32))

        # ---- hoisted constants: head lane masks + batch-block biases -------
        lane = jax.lax.broadcasted_iota(jnp.int32, (1, D_MODEL), 1)
        head_masks = [
            jnp.where((lane >= h * D_HEAD) & (lane < (h + 1) * D_HEAD),
                      1.0, 0.0).astype(jnp.bfloat16)
            for h in range(N_HEADS)]

        bec = dget("bid_enc_col"); ber = dget("bid_enc_row")
        bdc = dget("bid_dec_col"); bdr = dget("bid_dec_row")
        enc_bias = jnp.where(bec == ber, 0.0, _NEG)                  # (Me, Me)
        iq = jax.lax.broadcasted_iota(jnp.int32, (Md, Md), 0)
        ik = jax.lax.broadcasted_iota(jnp.int32, (Md, Md), 1)
        self_bias = jnp.where(jnp.logical_and(bdc == bdr, iq >= ik),
                              0.0, _NEG)                             # (Md, Md)
        cross_bias = jnp.where(bdc == ber, 0.0, _NEG)                # (Md, Me)

        # ------------------------------ encoder -----------------------------
        # K=1 input embedding as a VPU broadcast FMA fused with the PE add.
        x = (dget("src") * wget("enc_in_w", f32) + wget("enc_in_b", f32)
             + dget("pe_enc"))
        for i in range(n_enc_layers):
            x = _layer_norm(
                x + _mha(attn_p(f"enc{i}_attn"), x, x, enc_bias, head_masks),
                wget(f"enc{i}_ln1_g", f32), wget(f"enc{i}_ln1_b", f32))
            x = _layer_norm(
                x + _ffn(ffn_p(f"enc{i}_ffn"), x),
                wget(f"enc{i}_ln2_g", f32), wget(f"enc{i}_ln2_b", f32))
        memory = x  # (Me, D), stays in VMEM/vregs

        # ------------------------ decoder (teacher forced) ------------------
        content_emb = (jnp.dot(dget("content").astype(jnp.bfloat16),
                               wget("content_w"),
                               preferred_element_type=f32)
                       + wget("content_b", f32))                     # (Md, D)
        y = (dget("tgt") * wget("dec_in_w", f32) + wget("dec_in_b", f32)
             + dget("pe_dec") + content_emb)
        for i in range(n_dec_layers):
            y = _layer_norm(
                y + _mha(attn_p(f"dec{i}_self"), y, y, self_bias, head_masks),
                wget(f"dec{i}_ln1_g", f32), wget(f"dec{i}_ln1_b", f32))
            y = _layer_norm(
                y + _mha(attn_p(f"dec{i}_cross"), y, memory, cross_bias,
                         head_masks),
                wget(f"dec{i}_ln2_g", f32), wget(f"dec{i}_ln2_b", f32))
            y = _layer_norm(
                y + _ffn(ffn_p(f"dec{i}_ffn"), y),
                wget(f"dec{i}_ln3_g", f32), wget(f"dec{i}_ln3_b", f32))

        # Final N=1 projection as a lane-major (1, D) x (Md, D)^T matmul.
        # NOTE: at scale, pad/shape the output so its last dim is a multiple
        # of 128 lanes; at Md=8 this single store is negligible.
        out_ref[...] = (jax.lax.dot_general(
            wget("dec_out_w"), y.astype(jnp.bfloat16),
            (((1,), (1,)), ((), ())), preferred_element_type=f32)
            + wget("dec_out_b", f32))

    out_row = pl.pallas_call(
        kernel,
        out_shape=jax.ShapeDtypeStruct((1, Md), jnp.float32),
        compiler_params=pltpu.CompilerParams(
            vmem_limit_bytes=32 * 1024 * 1024),
    )(data_slab, param_slab)

    # (1, B*OUT_LEN) batch-major -> (OUT_LEN, B, 1), matching the reference's
    # sequence-first convention.
    return out_row.reshape(B, OUT_LEN).transpose(1, 0)[:, :, None]


# ----------------------------------------------------------------------------
# Deterministic parameter init (QKV pre-fused as (D, 3D))
# ----------------------------------------------------------------------------

def _dense(key, fan_in, fan_out):
    return 0.02 * jax.random.normal(key, (fan_in, fan_out), jnp.float32)


def init_params(key, n_enc_layers=N_ENC_LAYERS, n_dec_layers=N_DEC_LAYERS):
    ks = iter(jax.random.split(key, 256))

    def attn_params():
        return dict(
            wqkv=_dense(next(ks), D_MODEL, 3 * D_MODEL),
            bqkv=jnp.zeros((3 * D_MODEL,), jnp.float32),
            wo=_dense(next(ks), D_MODEL, D_MODEL),
            bo=jnp.zeros((D_MODEL,), jnp.float32))

    def ffn_params():
        return dict(w1=_dense(next(ks), D_MODEL, D_FF),
                    b1=jnp.zeros((D_FF,), jnp.float32),
                    w2=_dense(next(ks), D_FF, D_MODEL),
                    b2=jnp.zeros((D_MODEL,), jnp.float32))

    def ln_params():
        return dict(g=jnp.ones((D_MODEL,), jnp.float32),
                    b=jnp.zeros((D_MODEL,), jnp.float32))

    enc = dict(
        in_w=_dense(next(ks), 1, D_MODEL),
        in_b=jnp.zeros((D_MODEL,), jnp.float32),
        content_w=_dense(next(ks), CONTENT_DIM, D_MODEL),
        content_b=jnp.zeros((D_MODEL,), jnp.float32),
        layers=[dict(attn=attn_params(), ffn=ffn_params(),
                     ln1=ln_params(), ln2=ln_params())
                for _ in range(n_enc_layers)])
    dec = dict(
        in_w=_dense(next(ks), 1, D_MODEL),
        in_b=jnp.zeros((D_MODEL,), jnp.float32),
        # Stored as the transposed (1, D_MODEL) row so the final N=1 projection
        # is a lane-major (1, D) x (Md, D)^T matmul inside the fused kernel.
        out_w=_dense(next(ks), 1, D_MODEL),
        out_b=jnp.zeros((1,), jnp.float32),
        layers=[dict(self_attn=attn_params(), cross_attn=attn_params(),
                     ffn=ffn_params(), ln1=ln_params(), ln2=ln_params(),
                     ln3=ln_params())
                for _ in range(n_dec_layers)])
    return dict(enc=enc, dec=dec)


# ----------------------------------------------------------------------------
# Main
# ----------------------------------------------------------------------------

if __name__ == "__main__":
    B, IN_LEN, OUT_LEN = 2, 8, 4

    root = jax.random.PRNGKey(0)
    k_src, k_tgt, k_content, k_params = jax.random.split(root, 4)

    src = jax.random.normal(k_src, (B, IN_LEN), jnp.float32)
    tgt = jax.random.normal(k_tgt, (B, OUT_LEN), jnp.float32)
    content = jax.random.normal(k_content, (B, CONTENT_DIM), jnp.float32)

    params = init_params(k_params)

    fwd = jax.jit(transformer_forward)
    result = fwd(params, src, content, tgt)
    jax.block_until_ready(result)

    assert result.shape == (OUT_LEN, B, 1), result.shape
    assert jnp.all(jnp.isfinite(result))
    print("KERNEL_OK")
</pallas_src>

<mosaic_0001>
module attributes {stable_mosaic.version = 11 : i64} {
  func.func @kernel(%arg0: memref<96x128xf32, #tpu.memory_space<vmem>>, %arg1: memref<632x128xbf16, #tpu.memory_space<vmem>>, %arg2: memref<1x8xf32, #tpu.memory_space<vmem>>) attributes {dimension_semantics = [], scalar_prefetch = 0 : i64, scratch_operands = 0 : i64, tpu.core_type = #tpu.core_type<tc>} {
    %0 = tpu.iota {dimensions = array<i32: 1>} : vector<1x32xi32>
    %c0_i32 = arith.constant 0 : i32
    %1 = vector.broadcast %c0_i32 : i32 to vector<1x32xi32>
    %2 = arith.cmpi sge, %0, %1 : vector<1x32xi32>
    %c8_i32 = arith.constant 8 : i32
    %3 = vector.broadcast %c8_i32 : i32 to vector<1x32xi32>
    %4 = arith.cmpi slt, %0, %3 : vector<1x32xi32>
    %5 = arith.andi %2, %4 : vector<1x32xi1>
    %cst = arith.constant 1.000000e+00 : f32
    %cst_0 = arith.constant 0.000000e+00 : f32
    %6 = vector.broadcast %cst : f32 to vector<1x32xf32>
    %7 = vector.broadcast %cst_0 : f32 to vector<1x32xf32>
    %8 = arith.select %5, %6, %7 : vector<1x32xi1>, vector<1x32xf32>
    %9 = arith.truncf %8 : vector<1x32xf32> to vector<1x32xbf16>
    %c8_i32_1 = arith.constant 8 : i32
    %10 = vector.broadcast %c8_i32_1 : i32 to vector<1x32xi32>
    %11 = arith.cmpi sge, %0, %10 : vector<1x32xi32>
    %c16_i32 = arith.constant 16 : i32
    %12 = vector.broadcast %c16_i32 : i32 to vector<1x32xi32>
    %13 = arith.cmpi slt, %0, %12 : vector<1x32xi32>
    %14 = arith.andi %11, %13 : vector<1x32xi1>
    %cst_2 = arith.constant 1.000000e+00 : f32
    %cst_3 = arith.constant 0.000000e+00 : f32
    %15 = vector.broadcast %cst_2 : f32 to vector<1x32xf32>
    %16 = vector.broadcast %cst_3 : f32 to vector<1x32xf32>
    %17 = arith.select %14, %15, %16 : vector<1x32xi1>, vector<1x32xf32>
    %18 = arith.truncf %17 : vector<1x32xf32> to vector<1x32xbf16>
    %c16_i32_4 = arith.constant 16 : i32
    %19 = vector.broadcast %c16_i32_4 : i32 to vector<1x32xi32>
    %20 = arith.cmpi sge, %0, %19 : vector<1x32xi32>
    %c24_i32 = arith.constant 24 : i32
    %21 = vector.broadcast %c24_i32 : i32 to vector<1x32xi32>
    %22 = arith.cmpi slt, %0, %21 : vector<1x32xi32>
    %23 = arith.andi %20, %22 : vector<1x32xi1>
    %cst_5 = arith.constant 1.000000e+00 : f32
    %cst_6 = arith.constant 0.000000e+00 : f32
    %24 = vector.broadcast %cst_5 : f32 to vector<1x32xf32>
    %25 = vector.broadcast %cst_6 : f32 to vector<1x32xf32>
    %26 = arith.select %23, %24, %25 : vector<1x32xi1>, vector<1x32xf32>
    %27 = arith.truncf %26 : vector<1x32xf32> to vector<1x32xbf16>
    %c24_i32_7 = arith.constant 24 : i32
    %28 = vector.broadcast %c24_i32_7 : i32 to vector<1x32xi32>
    %29 = arith.cmpi sge, %0, %28 : vector<1x32xi32>
    %c32_i32 = arith.constant 32 : i32
    %30 = vector.broadcast %c32_i32 : i32 to vector<1x32xi32>
    %31 = arith.cmpi slt, %0, %30 : vector<1x32xi32>
    %32 = arith.andi %29, %31 : vector<1x32xi1>
    %cst_8 = arith.constant 1.000000e+00 : f32
    %cst_9 = arith.constant 0.000000e+00 : f32
    %33 = vector.broadcast %cst_8 : f32 to vector<1x32xf32>
    %34 = vector.broadcast %cst_9 : f32 to vector<1x32xf32>
    %35 = arith.select %32, %33, %34 : vector<1x32xi1>, vector<1x32xf32>
    %36 = arith.truncf %35 : vector<1x32xf32> to vector<1x32xbf16>
    %c56 = arith.constant 56 : index
    %c0 = arith.constant 0 : index
    %37 = vector.load %arg0[%c56, %c0] : memref<96x128xf32, #tpu.memory_space<vmem>>, vector<16x1xf32>
    %c72 = arith.constant 72 : index
    %c0_10 = arith.constant 0 : index
    %38 = vector.load %arg0[%c72, %c0_10] : memref<96x128xf32, #tpu.memory_space<vmem>>, vector<1x16xf32>
    %c80 = arith.constant 80 : index
    %c0_11 = arith.constant 0 : index
    %39 = vector.load %arg0[%c80, %c0_11] : memref<96x128xf32, #tpu.memory_space<vmem>>, vector<8x1xf32>
    %c88 = arith.constant 88 : index
    %c0_12 = arith.constant 0 : index
    %40 = vector.load %arg0[%c88, %c0_12] : memref<96x128xf32, #tpu.memory_space<vmem>>, vector<1x8xf32>
    %41 = vector.broadcast %37 : vector<16x1xf32> to vector<16x16xf32>
    %42 = vector.broadcast %38 : vector<1x16xf32> to vector<16x16xf32>
    %43 = arith.cmpf oeq, %41, %42 : vector<16x16xf32>
    %cst_13 = arith.constant 0.000000e+00 : f32
    %cst_14 = arith.constant -1.000000e+30 : f32
    %44 = vector.broadcast %cst_13 : f32 to vector<16x16xf32>
    %45 = vector.broadcast %cst_14 : f32 to vector<16x16xf32>
    %46 = arith.select %43, %44, %45 : vector<16x16xi1>, vector<16x16xf32>
    %47 = tpu.iota {dimensions = array<i32: 0>} : vector<8x8xi32>
    %48 = tpu.iota {dimensions = array<i32: 1>} : vector<8x8xi32>
    %49 = vector.broadcast %39 : vector<8x1xf32> to vector<8x8xf32>
    %50 = vector.broadcast %40 : vector<1x8xf32> to vector<8x8xf32>
    %51 = arith.cmpf oeq, %49, %50 : vector<8x8xf32>
    %52 = arith.cmpi sge, %47, %48 : vector<8x8xi32>
    %53 = arith.andi %51, %52 : vector<8x8xi1>
    %cst_15 = arith.constant 0.000000e+00 : f32
    %cst_16 = arith.constant -1.000000e+30 : f32
    %54 = vector.broadcast %cst_15 : f32 to vector<8x8xf32>
    %55 = vector.broadcast %cst_16 : f32 to vector<8x8xf32>
    %56 = arith.select %53, %54, %55 : vector<8x8xi1>, vector<8x8xf32>
    %57 = vector.broadcast %39 : vector<8x1xf32> to vector<8x16xf32>
    %58 = vector.broadcast %38 : vector<1x16xf32> to vector<8x16xf32>
    %59 = arith.cmpf oeq, %57, %58 : vector<8x16xf32>
    %cst_17 = arith.constant 0.000000e+00 : f32
    %cst_18 = arith.constant -1.000000e+30 : f32
    %60 = vector.broadcast %cst_17 : f32 to vector<8x16xf32>
    %61 = vector.broadcast %cst_18 : f32 to vector<8x16xf32>
    %62 = arith.select %59, %60, %61 : vector<8x16xi1>, vector<8x16xf32>
    %c0_19 = arith.constant 0 : index
    %c0_20 = arith.constant 0 : index
    %63 = vector.load %arg0[%c0_19, %c0_20] : memref<96x128xf32, #tpu.memory_space<vmem>>, vector<16x32xf32>
    %c0_21 = arith.constant 0 : index
    %c0_22 = arith.constant 0 : index
    %64 = vector.load %arg1[%c0_21, %c0_22] : memref<632x128xbf16, #tpu.memory_space<vmem>>, vector<1x32xbf16>
    %65 = arith.extf %64 : vector<1x32xbf16> to vector<1x32xf32>
    %66 = vector.broadcast %65 : vector<1x32xf32> to vector<16x32xf32>
    %67 = arith.mulf %63, %66 : vector<16x32xf32>
    %c8 = arith.constant 8 : index
    %c0_23 = arith.constant 0 : index
    %68 = vector.load %arg1[%c8, %c0_23] : memref<632x128xbf16, #tpu.memory_space<vmem>>, vector<1x32xbf16>
    %69 = arith.extf %68 : vector<1x32xbf16> to vector<1x32xf32>
    %70 = vector.broadcast %69 : vector<1x32xf32> to vector<16x32xf32>
    %71 = arith.addf %67, %70 : vector<16x32xf32>
    %c32 = arith.constant 32 : index
    %c0_24 = arith.constant 0 : index
    %72 = vector.load %arg0[%c32, %c0_24] : memref<96x128xf32, #tpu.memory_space<vmem>>, vector<16x32xf32>
    %73 = arith.addf %71, %72 : vector<16x32xf32>
    %c56_25 = arith.constant 56 : index
    %c0_26 = arith.constant 0 : index
    %74 = vector.load %arg1[%c56_25, %c0_26] : memref<632x128xbf16, #tpu.memory_space<vmem>>, vector<32x96xbf16>
    %c88_27 = arith.constant 88 : index
    %c0_28 = arith.constant 0 : index
    %75 = vector.load %arg1[%c88_27, %c0_28] : memref<632x128xbf16, #tpu.memory_space<vmem>>, vector<1x96xbf16>
    %76 = arith.extf %75 : vector<1x96xbf16> to vector<1x96xf32>
    %c96 = arith.constant 96 : index
    %c0_29 = arith.constant 0 : index
    %77 = vector.load %arg1[%c96, %c0_29] : memref<632x128xbf16, #tpu.memory_space<vmem>>, vector<32x32xbf16>
    %c128 = arith.constant 128 : index
    %c0_30 = arith.constant 0 : index
    %78 = vector.load %arg1[%c128, %c0_30] : memref<632x128xbf16, #tpu.memory_space<vmem>>, vector<1x32xbf16>
    %79 = arith.extf %78 : vector<1x32xbf16> to vector<1x32xf32>
    %80 = arith.truncf %73 : vector<16x32xf32> to vector<16x32xbf16>
    %cst_31 = arith.constant dense<0.000000e+00> : vector<16x96xf32>
    %81 = tpu.matmul %80, %74, %cst_31 {dimension_numbers = #tpu.dot_dimension_numbers<[1], [0], [0], [1], [0, 0, 1, 1], [], []>} : vector<16x32xbf16>, vector<32x96xbf16>, vector<16x96xf32> -> vector<16x96xf32>
    %82 = vector.broadcast %76 : vector<1x96xf32> to vector<16x96xf32>
    %83 = arith.addf %81, %82 : vector<16x96xf32>
    %84 = vector.extract_strided_slice %83 {offsets = [0, 0], sizes = [16, 32], strides = [1, 1]} : vector<16x96xf32> to vector<16x32xf32>
    %cst_32 = arith.constant 0.353553385 : f32
    %85 = vector.broadcast %cst_32 : f32 to vector<16x32xf32>
    %86 = arith.mulf %84, %85 : vector<16x32xf32>
    %87 = arith.truncf %86 : vector<16x32xf32> to vector<16x32xbf16>
    %88 = vector.extract_strided_slice %83 {offsets = [0, 32], sizes = [16, 32], strides = [1, 1]} : vector<16x96xf32> to vector<16x32xf32>
    %89 = arith.truncf %88 : vector<16x32xf32> to vector<16x32xbf16>
    %90 = vector.extract_strided_slice %83 {offsets = [0, 64], sizes = [16, 32], strides = [1, 1]} : vector<16x96xf32> to vector<16x32xf32>
    %91 = arith.truncf %90 : vector<16x32xf32> to vector<16x32xbf16>
    %92 = vector.broadcast %9 : vector<1x32xbf16> to vector<16x32xbf16>
    %93 = arith.mulf %87, %92 : vector<16x32xbf16>
    %cst_33 = arith.constant dense<0.000000e+00> : vector<16x16xf32>
    %94 = tpu.matmul %93, %89, %cst_33 {dimension_numbers = #tpu.dot_dimension_numbers<[1], [1], [0], [0], [0, 0, 1, 0], [], []>} : vector<16x32xbf16>, vector<16x32xbf16>, vector<16x16xf32> -> vector<16x16xf32>
    %95 = arith.addf %94, %46 : vector<16x16xf32>
    %cst_34 = arith.constant dense<0xFF800000> : vector<16xf32>
    %96 = vector.multi_reduction <maximumf>, %95, %cst_34 [1] : vector<16x16xf32> to vector<16xf32>
    %97 = vector.shape_cast %96 : vector<16xf32> to vector<16x1xf32>
    %98 = vector.broadcast %97 : vector<16x1xf32> to vector<16x16xf32>
    %99 = arith.subf %95, %98 : vector<16x16xf32>
    %100 = math.exp %99 : vector<16x16xf32>
    %cst_35 = arith.constant dense<0.000000e+00> : vector<16xf32>
    %101 = vector.multi_reduction <add>, %100, %cst_35 [1] : vector<16x16xf32> to vector<16xf32>
    %102 = vector.shape_cast %101 : vector<16xf32> to vector<16x1xf32>
    %103 = tpu.reciprocal %102 {approx = true} : vector<16x1xf32> -> vector<16x1xf32>
    %104 = vector.broadcast %103 : vector<16x1xf32> to vector<16x16xf32>
    %105 = arith.mulf %100, %104 : vector<16x16xf32>
    %106 = arith.truncf %105 : vector<16x16xf32> to vector<16x16xbf16>
    %107 = vector.broadcast %9 : vector<1x32xbf16> to vector<16x32xbf16>
    %108 = arith.mulf %91, %107 : vector<16x32xbf16>
    %cst_36 = arith.constant dense<0.000000e+00> : vector<16x32xf32>
    %109 = tpu.matmul %106, %108, %cst_36 {dimension_numbers = #tpu.dot_dimension_numbers<[1], [0], [0], [1], [0, 0, 1, 1], [], []>} : vector<16x16xbf16>, vector<16x32xbf16>, vector<16x32xf32> -> vector<16x32xf32>
    %110 = vector.broadcast %18 : vector<1x32xbf16> to vector<16x32xbf16>
    %111 = arith.mulf %87, %110 : vector<16x32xbf16>
    %cst_37 = arith.constant dense<0.000000e+00> : vector<16x16xf32>
    %112 = tpu.matmul %111, %89, %cst_37 {dimension_numbers = #tpu.dot_dimension_numbers<[1], [1], [0], [0], [0, 0, 1, 0], [], []>} : vector<16x32xbf16>, vector<16x32xbf16>, vector<16x16xf32> -> vector<16x16xf32>
    %113 = arith.addf %112, %46 : vector<16x16xf32>
    %cst_38 = arith.constant dense<0xFF800000> : vector<16xf32>
    %114 = vector.multi_reduction <maximumf>, %113, %cst_38 [1] : vector<16x16xf32> to vector<16xf32>
    %115 = vector.shape_cast %114 : vector<16xf32> to vector<16x1xf32>
    %116 = vector.broadcast %115 : vector<16x1xf32> to vector<16x16xf32>
    %117 = arith.subf %113, %116 : vector<16x16xf32>
    %118 = math.exp %117 : vector<16x16xf32>
    %cst_39 = arith.constant dense<0.000000e+00> : vector<16xf32>
    %119 = vector.multi_reduction <add>, %118, %cst_39 [1] : vector<16x16xf32> to vector<16xf32>
    %120 = vector.shape_cast %119 : vector<16xf32> to vector<16x1xf32>
    %121 = tpu.reciprocal %120 {approx = true} : vector<16x1xf32> -> vector<16x1xf32>
    %122 = vector.broadcast %121 : vector<16x1xf32> to vector<16x16xf32>
    %123 = arith.mulf %118, %122 : vector<16x16xf32>
    %124 = arith.truncf %123 : vector<16x16xf32> to vector<16x16xbf16>
    %125 = vector.broadcast %18 : vector<1x32xbf16> to vector<16x32xbf16>
    %126 = arith.mulf %91, %125 : vector<16x32xbf16>
    %cst_40 = arith.constant dense<0.000000e+00> : vector<16x32xf32>
    %127 = tpu.matmul %124, %126, %cst_40 {dimension_numbers = #tpu.dot_dimension_numbers<[1], [0], [0], [1], [0, 0, 1, 1], [], []>} : vector<16x16xbf16>, vector<16x32xbf16>, vector<16x32xf32> -> vector<16x32xf32>
    %128 = arith.addf %109, %127 : vector<16x32xf32>
    %129 = vector.broadcast %27 : vector<1x32xbf16> to vector<16x32xbf16>
    %130 = arith.mulf %87, %129 : vector<16x32xbf16>
    %cst_41 = arith.constant dense<0.000000e+00> : vector<16x16xf32>
    %131 = tpu.matmul %130, %89, %cst_41 {dimension_numbers = #tpu.dot_dimension_numbers<[1], [1], [0], [0], [0, 0, 1, 0], [], []>} : vector<16x32xbf16>, vector<16x32xbf16>, vector<16x16xf32> -> vector<16x16xf32>
    %132 = arith.addf %131, %46 : vector<16x16xf32>
    %cst_42 = arith.constant dense<0xFF800000> : vector<16xf32>
    %133 = vector.multi_reduction <maximumf>, %132, %cst_42 [1] : vector<16x16xf32> to vector<16xf32>
    %134 = vector.shape_cast %133 : vector<16xf32> to vector<16x1xf32>
    %135 = vector.broadcast %134 : vector<16x1xf32> to vector<16x16xf32>
    %136 = arith.subf %132, %135 : vector<16x16xf32>
    %137 = math.exp %136 : vector<16x16xf32>
    %cst_43 = arith.constant dense<0.000000e+00> : vector<16xf32>
    %138 = vector.multi_reduction <add>, %137, %cst_43 [1] : vector<16x16xf32> to vector<16xf32>
    %139 = vector.shape_cast %138 : vector<16xf32> to vector<16x1xf32>
    %140 = tpu.reciprocal %139 {approx = true} : vector<16x1xf32> -> vector<16x1xf32>
    %141 = vector.broadcast %140 : vector<16x1xf32> to vector<16x16xf32>
    %142 = arith.mulf %137, %141 : vector<16x16xf32>
    %143 = arith.truncf %142 : vector<16x16xf32> to vector<16x16xbf16>
    %144 = vector.broadcast %27 : vector<1x32xbf16> to vector<16x32xbf16>
    %145 = arith.mulf %91, %144 : vector<16x32xbf16>
    %cst_44 = arith.constant dense<0.000000e+00> : vector<16x32xf32>
    %146 = tpu.matmul %143, %145, %cst_44 {dimension_numbers = #tpu.dot_dimension_numbers<[1], [0], [0], [1], [0, 0, 1, 1], [], []>} : vector<16x16xbf16>, vector<16x32xbf16>, vector<16x32xf32> -> vector<16x32xf32>
    %147 = arith.addf %128, %146 : vector<16x32xf32>
    %148 = vector.broadcast %36 : vector<1x32xbf16> to vector<16x32xbf16>
    %149 = arith.mulf %87, %148 : vector<16x32xbf16>
    %cst_45 = arith.constant dense<0.000000e+00> : vector<16x16xf32>
    %150 = tpu.matmul %149, %89, %cst_45 {dimension_numbers = #tpu.dot_dimension_numbers<[1], [1], [0], [0], [0, 0, 1, 0], [], []>} : vector<16x32xbf16>, vector<16x32xbf16>, vector<16x16xf32> -> vector<16x16xf32>
    %151 = arith.addf %150, %46 : vector<16x16xf32>
    %cst_46 = arith.constant dense<0xFF800000> : vector<16xf32>
    %152 = vector.multi_reduction <maximumf>, %151, %cst_46 [1] : vector<16x16xf32> to vector<16xf32>
    %153 = vector.shape_cast %152 : vector<16xf32> to vector<16x1xf32>
    %154 = vector.broadcast %153 : vector<16x1xf32> to vector<16x16xf32>
    %155 = arith.subf %151, %154 : vector<16x16xf32>
    %156 = math.exp %155 : vector<16x16xf32>
    %cst_47 = arith.constant dense<0.000000e+00> : vector<16xf32>
    %157 = vector.multi_reduction <add>, %156, %cst_47 [1] : vector<16x16xf32> to vector<16xf32>
    %158 = vector.shape_cast %157 : vector<16xf32> to vector<16x1xf32>
    %159 = tpu.reciprocal %158 {approx = true} : vector<16x1xf32> -> vector<16x1xf32>
    %160 = vector.broadcast %159 : vector<16x1xf32> to vector<16x16xf32>
    %161 = arith.mulf %156, %160 : vector<16x16xf32>
    %162 = arith.truncf %161 : vector<16x16xf32> to vector<16x16xbf16>
    %163 = vector.broadcast %36 : vector<1x32xbf16> to vector<16x32xbf16>
    %164 = arith.mulf %91, %163 : vector<16x32xbf16>
    %cst_48 = arith.constant dense<0.000000e+00> : vector<16x32xf32>
    %165 = tpu.matmul %162, %164, %cst_48 {dimension_numbers = #tpu.dot_dimension_numbers<[1], [0], [0], [1], [0, 0, 1, 1], [], []>} : vector<16x16xbf16>, vector<16x32xbf16>, vector<16x32xf32> -> vector<16x32xf32>
    %166 = arith.addf %147, %165 : vector<16x32xf32>
    %167 = arith.truncf %166 : vector<16x32xf32> to vector<16x32xbf16>
    %cst_49 = arith.constant dense<0.000000e+00> : vector<16x32xf32>
    %168 = tpu.matmul %167, %77, %cst_49 {dimension_numbers = #tpu.dot_dimension_numbers<[1], [0], [0], [1], [0, 0, 1, 1], [], []>} : vector<16x32xbf16>, vector<32x32xbf16>, vector<16x32xf32> -> vector<16x32xf32>
    %169 = vector.broadcast %79 : vector<1x32xf32> to vector<16x32xf32>
    %170 = arith.addf %168, %169 : vector<16x32xf32>
    %171 = arith.addf %73, %170 : vector<16x32xf32>
    %c248 = arith.constant 248 : index
    %c0_50 = arith.constant 0 : index
    %172 = vector.load %arg1[%c248, %c0_50] : memref<632x128xbf16, #tpu.memory_space<vmem>>, vector<1x32xbf16>
    %173 = arith.extf %172 : vector<1x32xbf16> to vector<1x32xf32>
    %c256 = arith.constant 256 : index
    %c0_51 = arith.constant 0 : index
    %174 = vector.load %arg1[%c256, %c0_51] : memref<632x128xbf16, #tpu.memory_space<vmem>>, vector<1x32xbf16>
    %175 = arith.extf %174 : vector<1x32xbf16> to vector<1x32xf32>
    %cst_52 = arith.constant dense<0.000000e+00> : vector<16xf32>
    %176 = vector.multi_reduction <add>, %171, %cst_52 [1] : vector<16x32xf32> to vector<16xf32>
    %177 = vector.shape_cast %176 : vector<16xf32> to vector<16x1xf32>
    %cst_53 = arith.constant 3.200000e+01 : f32
    %178 = vector.broadcast %cst_53 : f32 to vector<16x1xf32>
    %179 = arith.divf %177, %178 : vector<16x1xf32>
    %180 = vector.broadcast %179 : vector<16x1xf32> to vector<16x32xf32>
    %181 = arith.subf %171, %180 : vector<16x32xf32>
    %182 = arith.mulf %181, %181 : vector<16x32xf32>
    %cst_54 = arith.constant dense<0.000000e+00> : vector<16xf32>
    %183 = vector.multi_reduction <add>, %182, %cst_54 [1] : vector<16x32xf32> to vector<16xf32>
    %184 = vector.shape_cast %183 : vector<16xf32> to vector<16x1xf32>
    %cst_55 = arith.constant 3.200000e+01 : f32
    %185 = vector.broadcast %cst_55 : f32 to vector<16x1xf32>
    %186 = arith.divf %184, %185 : vector<16x1xf32>
    %187 = vector.broadcast %179 : vector<16x1xf32> to vector<16x32xf32>
    %188 = arith.subf %171, %187 : vector<16x32xf32>
    %cst_56 = arith.constant 9.99999974E-6 : f32
    %189 = vector.broadcast %cst_56 : f32 to vector<16x1xf32>
    %190 = arith.addf %186, %189 : vector<16x1xf32>
    %191 = math.rsqrt %190 : vector<16x1xf32>
    %192 = vector.broadcast %191 : vector<16x1xf32> to vector<16x32xf32>
    %193 = arith.mulf %188, %192 : vector<16x32xf32>
    %194 = vector.broadcast %173 : vector<1x32xf32> to vector<16x32xf32>
    %195 = arith.mulf %193, %194 : vector<16x32xf32>
    %196 = vector.broadcast %175 : vector<1x32xf32> to vector<16x32xf32>
    %197 = arith.addf %195, %196 : vector<16x32xf32>
    %c136 = arith.constant 136 : index
    %c0_57 = arith.constant 0 : index
    %198 = vector.load %arg1[%c136, %c0_57] : memref<632x128xbf16, #tpu.memory_space<vmem>>, vector<32x64xbf16>
    %c168 = arith.constant 168 : index
    %c0_58 = arith.constant 0 : index
    %199 = vector.load %arg1[%c168, %c0_58] : memref<632x128xbf16, #tpu.memory_space<vmem>>, vector<1x64xbf16>
    %200 = arith.extf %199 : vector<1x64xbf16> to vector<1x64xf32>
    %c176 = arith.constant 176 : index
    %c0_59 = arith.constant 0 : index
    %201 = vector.load %arg1[%c176, %c0_59] : memref<632x128xbf16, #tpu.memory_space<vmem>>, vector<64x32xbf16>
    %c240 = arith.constant 240 : index
    %c0_60 = arith.constant 0 : index
    %202 = vector.load %arg1[%c240, %c0_60] : memref<632x128xbf16, #tpu.memory_space<vmem>>, vector<1x32xbf16>
    %203 = arith.extf %202 : vector<1x32xbf16> to vector<1x32xf32>
    %204 = arith.truncf %197 : vector<16x32xf32> to vector<16x32xbf16>
    %cst_61 = arith.constant dense<0.000000e+00> : vector<16x64xf32>
    %205 = tpu.matmul %204, %198, %cst_61 {dimension_numbers = #tpu.dot_dimension_numbers<[1], [0], [0], [1], [0, 0, 1, 1], [], []>} : vector<16x32xbf16>, vector<32x64xbf16>, vector<16x64xf32> -> vector<16x64xf32>
    %206 = vector.broadcast %200 : vector<1x64xf32> to vector<16x64xf32>
    %207 = arith.addf %205, %206 : vector<16x64xf32>
    %cst_62 = arith.constant 0.000000e+00 : f32
    %208 = vector.broadcast %cst_62 : f32 to vector<16x64xf32>
    %209 = arith.maximumf %207, %208 : vector<16x64xf32>
    %210 = arith.truncf %209 : vector<16x64xf32> to vector<16x64xbf16>
    %cst_63 = arith.constant dense<0.000000e+00> : vector<16x32xf32>
    %211 = tpu.matmul %210, %201, %cst_63 {dimension_numbers = #tpu.dot_dimension_numbers<[1], [0], [0], [1], [0, 0, 1, 1], [], []>} : vector<16x64xbf16>, vector<64x32xbf16>, vector<16x32xf32> -> vector<16x32xf32>
    %212 = vector.broadcast %203 : vector<1x32xf32> to vector<16x32xf32>
    %213 = arith.addf %211, %212 : vector<16x32xf32>
    %214 = arith.addf %197, %213 : vector<16x32xf32>
    %c264 = arith.constant 264 : index
    %c0_64 = arith.constant 0 : index
    %215 = vector.load %arg1[%c264, %c0_64] : memref<632x128xbf16, #tpu.memory_space<vmem>>, vector<1x32xbf16>
    %216 = arith.extf %215 : vector<1x32xbf16> to vector<1x32xf32>
    %c272 = arith.constant 272 : index
    %c0_65 = arith.constant 0 : index
    %217 = vector.load %arg1[%c272, %c0_65] : memref<632x128xbf16, #tpu.memory_space<vmem>>, vector<1x32xbf16>
    %218 = arith.extf %217 : vector<1x32xbf16> to vector<1x32xf32>
    %cst_66 = arith.constant dense<0.000000e+00> : vector<16xf32>
    %219 = vector.multi_reduction <add>, %214, %cst_66 [1] : vector<16x32xf32> to vector<16xf32>
    %220 = vector.shape_cast %219 : vector<16xf32> to vector<16x1xf32>
    %cst_67 = arith.constant 3.200000e+01 : f32
    %221 = vector.broadcast %cst_67 : f32 to vector<16x1xf32>
    %222 = arith.divf %220, %221 : vector<16x1xf32>
    %223 = vector.broadcast %222 : vector<16x1xf32> to vector<16x32xf32>
    %224 = arith.subf %214, %223 : vector<16x32xf32>
    %225 = arith.mulf %224, %224 : vector<16x32xf32>
    %cst_68 = arith.constant dense<0.000000e+00> : vector<16xf32>
    %226 = vector.multi_reduction <add>, %225, %cst_68 [1] : vector<16x32xf32> to vector<16xf32>
    %227 = vector.shape_cast %226 : vector<16xf32> to vector<16x1xf32>
    %cst_69 = arith.constant 3.200000e+01 : f32
    %228 = vector.broadcast %cst_69 : f32 to vector<16x1xf32>
    %229 = arith.divf %227, %228 : vector<16x1xf32>
    %230 = vector.broadcast %222 : vector<16x1xf32> to vector<16x32xf32>
    %231 = arith.subf %214, %230 : vector<16x32xf32>
    %cst_70 = arith.constant 9.99999974E-6 : f32
    %232 = vector.broadcast %cst_70 : f32 to vector<16x1xf32>
    %233 = arith.addf %229, %232 : vector<16x1xf32>
    %234 = math.rsqrt %233 : vector<16x1xf32>
    %235 = vector.broadcast %234 : vector<16x1xf32> to vector<16x32xf32>
    %236 = arith.mulf %231, %235 : vector<16x32xf32>
    %237 = vector.broadcast %216 : vector<1x32xf32> to vector<16x32xf32>
    %238 = arith.mulf %236, %237 : vector<16x32xf32>
    %239 = vector.broadcast %218 : vector<1x32xf32> to vector<16x32xf32>
    %240 = arith.addf %238, %239 : vector<16x32xf32>
    %c24 = arith.constant 24 : index
    %c0_71 = arith.constant 0 : index
    %241 = vector.load %arg0[%c24, %c0_71] : memref<96x128xf32, #tpu.memory_space<vmem>>, vector<8x32xf32>
    %242 = arith.truncf %241 : vector<8x32xf32> to vector<8x32xbf16>
    %c16 = arith.constant 16 : index
    %c0_72 = arith.constant 0 : index
    %243 = vector.load %arg1[%c16, %c0_72] : memref<632x128xbf16, #tpu.memory_space<vmem>>, vector<32x32xbf16>
    %cst_73 = arith.constant dense<0.000000e+00> : vector<8x32xf32>
    %244 = tpu.matmul %242, %243, %cst_73 {dimension_numbers = #tpu.dot_dimension_numbers<[1], [0], [0], [1], [0, 0, 1, 1], [], []>} : vector<8x32xbf16>, vector<32x32xbf16>, vector<8x32xf32> -> vector<8x32xf32>
    %c48 = arith.constant 48 : index
    %c0_74 = arith.constant 0 : index
    %245 = vector.load %arg1[%c48, %c0_74] : memref<632x128xbf16, #tpu.memory_space<vmem>>, vector<1x32xbf16>
    %246 = arith.extf %245 : vector<1x32xbf16> to vector<1x32xf32>
    %247 = vector.broadcast %246 : vector<1x32xf32> to vector<8x32xf32>
    %248 = arith.addf %244, %247 : vector<8x32xf32>
    %c16_75 = arith.constant 16 : index
    %c0_76 = arith.constant 0 : index
    %249 = vector.load %arg0[%c16_75, %c0_76] : memref<96x128xf32, #tpu.memory_space<vmem>>, vector<8x32xf32>
    %c280 = arith.constant 280 : index
    %c0_77 = arith.constant 0 : index
    %250 = vector.load %arg1[%c280, %c0_77] : memref<632x128xbf16, #tpu.memory_space<vmem>>, vector<1x32xbf16>
    %251 = arith.extf %250 : vector<1x32xbf16> to vector<1x32xf32>
    %252 = vector.broadcast %251 : vector<1x32xf32> to vector<8x32xf32>
    %253 = arith.mulf %249, %252 : vector<8x32xf32>
    %c288 = arith.constant 288 : index
    %c0_78 = arith.constant 0 : index
    %254 = vector.load %arg1[%c288, %c0_78] : memref<632x128xbf16, #tpu.memory_space<vmem>>, vector<1x32xbf16>
    %255 = arith.extf %254 : vector<1x32xbf16> to vector<1x32xf32>
    %256 = vector.broadcast %255 : vector<1x32xf32> to vector<8x32xf32>
    %257 = arith.addf %253, %256 : vector<8x32xf32>
    %c48_79 = arith.constant 48 : index
    %c0_80 = arith.constant 0 : index
    %258 = vector.load %arg0[%c48_79, %c0_80] : memref<96x128xf32, #tpu.memory_space<vmem>>, vector<8x32xf32>
    %259 = arith.addf %257, %258 : vector<8x32xf32>
    %260 = arith.addf %259, %248 : vector<8x32xf32>
    %c312 = arith.constant 312 : index
    %c0_81 = arith.constant 0 : index
    %261 = vector.load %arg1[%c312, %c0_81] : memref<632x128xbf16, #tpu.memory_space<vmem>>, vector<32x96xbf16>
    %c344 = arith.constant 344 : index
    %c0_82 = arith.constant 0 : index
    %262 = vector.load %arg1[%c344, %c0_82] : memref<632x128xbf16, #tpu.memory_space<vmem>>, vector<1x96xbf16>
    %263 = arith.extf %262 : vector<1x96xbf16> to vector<1x96xf32>
    %c352 = arith.constant 352 : index
    %c0_83 = arith.constant 0 : index
    %264 = vector.load %arg1[%c352, %c0_83] : memref<632x128xbf16, #tpu.memory_space<vmem>>, vector<32x32xbf16>
    %c384 = arith.constant 384 : index
    %c0_84 = arith.constant 0 : index
    %265 = vector.load %arg1[%c384, %c0_84] : memref<632x128xbf16, #tpu.memory_space<vmem>>, vector<1x32xbf16>
    %266 = arith.extf %265 : vector<1x32xbf16> to vector<1x32xf32>
    %267 = arith.truncf %260 : vector<8x32xf32> to vector<8x32xbf16>
    %cst_85 = arith.constant dense<0.000000e+00> : vector<8x96xf32>
    %268 = tpu.matmul %267, %261, %cst_85 {dimension_numbers = #tpu.dot_dimension_numbers<[1], [0], [0], [1], [0, 0, 1, 1], [], []>} : vector<8x32xbf16>, vector<32x96xbf16>, vector<8x96xf32> -> vector<8x96xf32>
    %269 = vector.broadcast %263 : vector<1x96xf32> to vector<8x96xf32>
    %270 = arith.addf %268, %269 : vector<8x96xf32>
    %271 = vector.extract_strided_slice %270 {offsets = [0, 0], sizes = [8, 32], strides = [1, 1]} : vector<8x96xf32> to vector<8x32xf32>
    %cst_86 = arith.constant 0.353553385 : f32
    %272 = vector.broadcast %cst_86 : f32 to vector<8x32xf32>
    %273 = arith.mulf %271, %272 : vector<8x32xf32>
    %274 = arith.truncf %273 : vector<8x32xf32> to vector<8x32xbf16>
    %275 = vector.extract_strided_slice %270 {offsets = [0, 32], sizes = [8, 32], strides = [1, 1]} : vector<8x96xf32> to vector<8x32xf32>
    %276 = arith.truncf %275 : vector<8x32xf32> to vector<8x32xbf16>
    %277 = vector.extract_strided_slice %270 {offsets = [0, 64], sizes = [8, 32], strides = [1, 1]} : vector<8x96xf32> to vector<8x32xf32>
    %278 = arith.truncf %277 : vector<8x32xf32> to vector<8x32xbf16>
    %279 = vector.broadcast %9 : vector<1x32xbf16> to vector<8x32xbf16>
    %280 = arith.mulf %274, %279 : vector<8x32xbf16>
    %cst_87 = arith.constant dense<0.000000e+00> : vector<8x8xf32>
    %281 = tpu.matmul %280, %276, %cst_87 {dimension_numbers = #tpu.dot_dimension_numbers<[1], [1], [0], [0], [0, 0, 1, 0], [], []>} : vector<8x32xbf16>, vector<8x32xbf16>, vector<8x8xf32> -> vector<8x8xf32>
    %282 = arith.addf %281, %56 : vector<8x8xf32>
    %cst_88 = arith.constant dense<0xFF800000> : vector<8xf32>
    %283 = vector.multi_reduction <maximumf>, %282, %cst_88 [1] : vector<8x8xf32> to vector<8xf32>
    %284 = vector.shape_cast %283 : vector<8xf32> to vector<8x1xf32>
    %285 = vector.broadcast %284 : vector<8x1xf32> to vector<8x8xf32>
    %286 = arith.subf %282, %285 : vector<8x8xf32>
    %287 = math.exp %286 : vector<8x8xf32>
    %cst_89 = arith.constant dense<0.000000e+00> : vector<8xf32>
    %288 = vector.multi_reduction <add>, %287, %cst_89 [1] : vector<8x8xf32> to vector<8xf32>
    %289 = vector.shape_cast %288 : vector<8xf32> to vector<8x1xf32>
    %290 = tpu.reciprocal %289 {approx = true} : vector<8x1xf32> -> vector<8x1xf32>
    %291 = vector.broadcast %290 : vector<8x1xf32> to vector<8x8xf32>
    %292 = arith.mulf %287, %291 : vector<8x8xf32>
    %293 = arith.truncf %292 : vector<8x8xf32> to vector<8x8xbf16>
    %294 = vector.broadcast %9 : vector<1x32xbf16> to vector<8x32xbf16>
    %295 = arith.mulf %278, %294 : vector<8x32xbf16>
    %cst_90 = arith.constant dense<0.000000e+00> : vector<8x32xf32>
    %296 = tpu.matmul %293, %295, %cst_90 {dimension_numbers = #tpu.dot_dimension_numbers<[1], [0], [0], [1], [0, 0, 1, 1], [], []>} : vector<8x8xbf16>, vector<8x32xbf16>, vector<8x32xf32> -> vector<8x32xf32>
    %297 = vector.broadcast %18 : vector<1x32xbf16> to vector<8x32xbf16>
    %298 = arith.mulf %274, %297 : vector<8x32xbf16>
    %cst_91 = arith.constant dense<0.000000e+00> : vector<8x8xf32>
    %299 = tpu.matmul %298, %276, %cst_91 {dimension_numbers = #tpu.dot_dimension_numbers<[1], [1], [0], [0], [0, 0, 1, 0], [], []>} : vector<8x32xbf16>, vector<8x32xbf16>, vector<8x8xf32> -> vector<8x8xf32>
    %300 = arith.addf %299, %56 : vector<8x8xf32>
    %cst_92 = arith.constant dense<0xFF800000> : vector<8xf32>
    %301 = vector.multi_reduction <maximumf>, %300, %cst_92 [1] : vector<8x8xf32> to vector<8xf32>
    %302 = vector.shape_cast %301 : vector<8xf32> to vector<8x1xf32>
    %303 = vector.broadcast %302 : vector<8x1xf32> to vector<8x8xf32>
    %304 = arith.subf %300, %303 : vector<8x8xf32>
    %305 = math.exp %304 : vector<8x8xf32>
    %cst_93 = arith.constant dense<0.000000e+00> : vector<8xf32>
    %306 = vector.multi_reduction <add>, %305, %cst_93 [1] : vector<8x8xf32> to vector<8xf32>
    %307 = vector.shape_cast %306 : vector<8xf32> to vector<8x1xf32>
    %308 = tpu.reciprocal %307 {approx = true} : vector<8x1xf32> -> vector<8x1xf32>
    %309 = vector.broadcast %308 : vector<8x1xf32> to vector<8x8xf32>
    %310 = arith.mulf %305, %309 : vector<8x8xf32>
    %311 = arith.truncf %310 : vector<8x8xf32> to vector<8x8xbf16>
    %312 = vector.broadcast %18 : vector<1x32xbf16> to vector<8x32xbf16>
    %313 = arith.mulf %278, %312 : vector<8x32xbf16>
    %cst_94 = arith.constant dense<0.000000e+00> : vector<8x32xf32>
    %314 = tpu.matmul %311, %313, %cst_94 {dimension_numbers = #tpu.dot_dimension_numbers<[1], [0], [0], [1], [0, 0, 1, 1], [], []>} : vector<8x8xbf16>, vector<8x32xbf16>, vector<8x32xf32> -> vector<8x32xf32>
    %315 = arith.addf %296, %314 : vector<8x32xf32>
    %316 = vector.broadcast %27 : vector<1x32xbf16> to vector<8x32xbf16>
    %317 = arith.mulf %274, %316 : vector<8x32xbf16>
    %cst_95 = arith.constant dense<0.000000e+00> : vector<8x8xf32>
    %318 = tpu.matmul %317, %276, %cst_95 {dimension_numbers = #tpu.dot_dimension_numbers<[1], [1], [0], [0], [0, 0, 1, 0], [], []>} : vector<8x32xbf16>, vector<8x32xbf16>, vector<8x8xf32> -> vector<8x8xf32>
    %319 = arith.addf %318, %56 : vector<8x8xf32>
    %cst_96 = arith.constant dense<0xFF800000> : vector<8xf32>
    %320 = vector.multi_reduction <maximumf>, %319, %cst_96 [1] : vector<8x8xf32> to vector<8xf32>
    %321 = vector.shape_cast %320 : vector<8xf32> to vector<8x1xf32>
    %322 = vector.broadcast %321 : vector<8x1xf32> to vector<8x8xf32>
    %323 = arith.subf %319, %322 : vector<8x8xf32>
    %324 = math.exp %323 : vector<8x8xf32>
    %cst_97 = arith.constant dense<0.000000e+00> : vector<8xf32>
    %325 = vector.multi_reduction <add>, %324, %cst_97 [1] : vector<8x8xf32> to vector<8xf32>
    %326 = vector.shape_cast %325 : vector<8xf32> to vector<8x1xf32>
    %327 = tpu.reciprocal %326 {approx = true} : vector<8x1xf32> -> vector<8x1xf32>
    %328 = vector.broadcast %327 : vector<8x1xf32> to vector<8x8xf32>
    %329 = arith.mulf %324, %328 : vector<8x8xf32>
    %330 = arith.truncf %329 : vector<8x8xf32> to vector<8x8xbf16>
    %331 = vector.broadcast %27 : vector<1x32xbf16> to vector<8x32xbf16>
    %332 = arith.mulf %278, %331 : vector<8x32xbf16>
    %cst_98 = arith.constant dense<0.000000e+00> : vector<8x32xf32>
    %333 = tpu.matmul %330, %332, %cst_98 {dimension_numbers = #tpu.dot_dimension_numbers<[1], [0], [0], [1], [0, 0, 1, 1], [], []>} : vector<8x8xbf16>, vector<8x32xbf16>, vector<8x32xf32> -> vector<8x32xf32>
    %334 = arith.addf %315, %333 : vector<8x32xf32>
    %335 = vector.broadcast %36 : vector<1x32xbf16> to vector<8x32xbf16>
    %336 = arith.mulf %274, %335 : vector<8x32xbf16>
    %cst_99 = arith.constant dense<0.000000e+00> : vector<8x8xf32>
    %337 = tpu.matmul %336, %276, %cst_99 {dimension_numbers = #tpu.dot_dimension_numbers<[1], [1], [0], [0], [0, 0, 1, 0], [], []>} : vector<8x32xbf16>, vector<8x32xbf16>, vector<8x8xf32> -> vector<8x8xf32>
    %338 = arith.addf %337, %56 : vector<8x8xf32>
    %cst_100 = arith.constant dense<0xFF800000> : vector<8xf32>
    %339 = vector.multi_reduction <maximumf>, %338, %cst_100 [1] : vector<8x8xf32> to vector<8xf32>
    %340 = vector.shape_cast %339 : vector<8xf32> to vector<8x1xf32>
    %341 = vector.broadcast %340 : vector<8x1xf32> to vector<8x8xf32>
    %342 = arith.subf %338, %341 : vector<8x8xf32>
    %343 = math.exp %342 : vector<8x8xf32>
    %cst_101 = arith.constant dense<0.000000e+00> : vector<8xf32>
    %344 = vector.multi_reduction <add>, %343, %cst_101 [1] : vector<8x8xf32> to vector<8xf32>
    %345 = vector.shape_cast %344 : vector<8xf32> to vector<8x1xf32>
    %346 = tpu.reciprocal %345 {approx = true} : vector<8x1xf32> -> vector<8x1xf32>
    %347 = vector.broadcast %346 : vector<8x1xf32> to vector<8x8xf32>
    %348 = arith.mulf %343, %347 : vector<8x8xf32>
    %349 = arith.truncf %348 : vector<8x8xf32> to vector<8x8xbf16>
    %350 = vector.broadcast %36 : vector<1x32xbf16> to vector<8x32xbf16>
    %351 = arith.mulf %278, %350 : vector<8x32xbf16>
    %cst_102 = arith.constant dense<0.000000e+00> : vector<8x32xf32>
    %352 = tpu.matmul %349, %351, %cst_102 {dimension_numbers = #tpu.dot_dimension_numbers<[1], [0], [0], [1], [0, 0, 1, 1], [], []>} : vector<8x8xbf16>, vector<8x32xbf16>, vector<8x32xf32> -> vector<8x32xf32>
    %353 = arith.addf %334, %352 : vector<8x32xf32>
    %354 = arith.truncf %353 : vector<8x32xf32> to vector<8x32xbf16>
    %cst_103 = arith.constant dense<0.000000e+00> : vector<8x32xf32>
    %355 = tpu.matmul %354, %264, %cst_103 {dimension_numbers = #tpu.dot_dimension_numbers<[1], [0], [0], [1], [0, 0, 1, 1], [], []>} : vector<8x32xbf16>, vector<32x32xbf16>, vector<8x32xf32> -> vector<8x32xf32>
    %356 = vector.broadcast %266 : vector<1x32xf32> to vector<8x32xf32>
    %357 = arith.addf %355, %356 : vector<8x32xf32>
    %358 = arith.addf %260, %357 : vector<8x32xf32>
    %c584 = arith.constant 584 : index
    %c0_104 = arith.constant 0 : index
    %359 = vector.load %arg1[%c584, %c0_104] : memref<632x128xbf16, #tpu.memory_space<vmem>>, vector<1x32xbf16>
    %360 = arith.extf %359 : vector<1x32xbf16> to vector<1x32xf32>
    %c592 = arith.constant 592 : index
    %c0_105 = arith.constant 0 : index
    %361 = vector.load %arg1[%c592, %c0_105] : memref<632x128xbf16, #tpu.memory_space<vmem>>, vector<1x32xbf16>
    %362 = arith.extf %361 : vector<1x32xbf16> to vector<1x32xf32>
    %cst_106 = arith.constant dense<0.000000e+00> : vector<8xf32>
    %363 = vector.multi_reduction <add>, %358, %cst_106 [1] : vector<8x32xf32> to vector<8xf32>
    %364 = vector.shape_cast %363 : vector<8xf32> to vector<8x1xf32>
    %cst_107 = arith.constant 3.200000e+01 : f32
    %365 = vector.broadcast %cst_107 : f32 to vector<8x1xf32>
    %366 = arith.divf %364, %365 : vector<8x1xf32>
    %367 = vector.broadcast %366 : vector<8x1xf32> to vector<8x32xf32>
    %368 = arith.subf %358, %367 : vector<8x32xf32>
    %369 = arith.mulf %368, %368 : vector<8x32xf32>
    %cst_108 = arith.constant dense<0.000000e+00> : vector<8xf32>
    %370 = vector.multi_reduction <add>, %369, %cst_108 [1] : vector<8x32xf32> to vector<8xf32>
    %371 = vector.shape_cast %370 : vector<8xf32> to vector<8x1xf32>
    %cst_109 = arith.constant 3.200000e+01 : f32
    %372 = vector.broadcast %cst_109 : f32 to vector<8x1xf32>
    %373 = arith.divf %371, %372 : vector<8x1xf32>
    %374 = vector.broadcast %366 : vector<8x1xf32> to vector<8x32xf32>
    %375 = arith.subf %358, %374 : vector<8x32xf32>
    %cst_110 = arith.constant 9.99999974E-6 : f32
    %376 = vector.broadcast %cst_110 : f32 to vector<8x1xf32>
    %377 = arith.addf %373, %376 : vector<8x1xf32>
    %378 = math.rsqrt %377 : vector<8x1xf32>
    %379 = vector.broadcast %378 : vector<8x1xf32> to vector<8x32xf32>
    %380 = arith.mulf %375, %379 : vector<8x32xf32>
    %381 = vector.broadcast %360 : vector<1x32xf32> to vector<8x32xf32>
    %382 = arith.mulf %380, %381 : vector<8x32xf32>
    %383 = vector.broadcast %362 : vector<1x32xf32> to vector<8x32xf32>
    %384 = arith.addf %382, %383 : vector<8x32xf32>
    %c392 = arith.constant 392 : index
    %c0_111 = arith.constant 0 : index
    %385 = vector.load %arg1[%c392, %c0_111] : memref<632x128xbf16, #tpu.memory_space<vmem>>, vector<32x96xbf16>
    %c424 = arith.constant 424 : index
    %c0_112 = arith.constant 0 : index
    %386 = vector.load %arg1[%c424, %c0_112] : memref<632x128xbf16, #tpu.memory_space<vmem>>, vector<1x96xbf16>
    %387 = arith.extf %386 : vector<1x96xbf16> to vector<1x96xf32>
    %c432 = arith.constant 432 : index
    %c0_113 = arith.constant 0 : index
    %388 = vector.load %arg1[%c432, %c0_113] : memref<632x128xbf16, #tpu.memory_space<vmem>>, vector<32x32xbf16>
    %c464 = arith.constant 464 : index
    %c0_114 = arith.constant 0 : index
    %389 = vector.load %arg1[%c464, %c0_114] : memref<632x128xbf16, #tpu.memory_space<vmem>>, vector<1x32xbf16>
    %390 = arith.extf %389 : vector<1x32xbf16> to vector<1x32xf32>
    %391 = arith.truncf %384 : vector<8x32xf32> to vector<8x32xbf16>
    %cst_115 = arith.constant dense<0.000000e+00> : vector<8x96xf32>
    %392 = tpu.matmul %391, %385, %cst_115 {dimension_numbers = #tpu.dot_dimension_numbers<[1], [0], [0], [1], [0, 0, 1, 1], [], []>} : vector<8x32xbf16>, vector<32x96xbf16>, vector<8x96xf32> -> vector<8x96xf32>
    %393 = vector.broadcast %387 : vector<1x96xf32> to vector<8x96xf32>
    %394 = arith.addf %392, %393 : vector<8x96xf32>
    %395 = arith.truncf %240 : vector<16x32xf32> to vector<16x32xbf16>
    %cst_116 = arith.constant dense<0.000000e+00> : vector<16x96xf32>
    %396 = tpu.matmul %395, %385, %cst_116 {dimension_numbers = #tpu.dot_dimension_numbers<[1], [0], [0], [1], [0, 0, 1, 1], [], []>} : vector<16x32xbf16>, vector<32x96xbf16>, vector<16x96xf32> -> vector<16x96xf32>
    %397 = vector.broadcast %387 : vector<1x96xf32> to vector<16x96xf32>
    %398 = arith.addf %396, %397 : vector<16x96xf32>
    %399 = vector.extract_strided_slice %394 {offsets = [0, 0], sizes = [8, 32], strides = [1, 1]} : vector<8x96xf32> to vector<8x32xf32>
    %cst_117 = arith.constant 0.353553385 : f32
    %400 = vector.broadcast %cst_117 : f32 to vector<8x32xf32>
    %401 = arith.mulf %399, %400 : vector<8x32xf32>
    %402 = arith.truncf %401 : vector<8x32xf32> to vector<8x32xbf16>
    %403 = vector.extract_strided_slice %398 {offsets = [0, 32], sizes = [16, 32], strides = [1, 1]} : vector<16x96xf32> to vector<16x32xf32>
    %404 = arith.truncf %403 : vector<16x32xf32> to vector<16x32xbf16>
    %405 = vector.extract_strided_slice %398 {offsets = [0, 64], sizes = [16, 32], strides = [1, 1]} : vector<16x96xf32> to vector<16x32xf32>
    %406 = arith.truncf %405 : vector<16x32xf32> to vector<16x32xbf16>
    %407 = vector.broadcast %9 : vector<1x32xbf16> to vector<8x32xbf16>
    %408 = arith.mulf %402, %407 : vector<8x32xbf16>
    %cst_118 = arith.constant dense<0.000000e+00> : vector<8x16xf32>
    %409 = tpu.matmul %408, %404, %cst_118 {dimension_numbers = #tpu.dot_dimension_numbers<[1], [1], [0], [0], [0, 0, 1, 0], [], []>} : vector<8x32xbf16>, vector<16x32xbf16>, vector<8x16xf32> -> vector<8x16xf32>
    %410 = arith.addf %409, %62 : vector<8x16xf32>
    %cst_119 = arith.constant dense<0xFF800000> : vector<8xf32>
    %411 = vector.multi_reduction <maximumf>, %410, %cst_119 [1] : vector<8x16xf32> to vector<8xf32>
    %412 = vector.shape_cast %411 : vector<8xf32> to vector<8x1xf32>
    %413 = vector.broadcast %412 : vector<8x1xf32> to vector<8x16xf32>
    %414 = arith.subf %410, %413 : vector<8x16xf32>
    %415 = math.exp %414 : vector<8x16xf32>
    %cst_120 = arith.constant dense<0.000000e+00> : vector<8xf32>
    %416 = vector.multi_reduction <add>, %415, %cst_120 [1] : vector<8x16xf32> to vector<8xf32>
    %417 = vector.shape_cast %416 : vector<8xf32> to vector<8x1xf32>
    %418 = tpu.reciprocal %417 {approx = true} : vector<8x1xf32> -> vector<8x1xf32>
    %419 = vector.broadcast %418 : vector<8x1xf32> to vector<8x16xf32>
    %420 = arith.mulf %415, %419 : vector<8x16xf32>
    %421 = arith.truncf %420 : vector<8x16xf32> to vector<8x16xbf16>
    %422 = vector.broadcast %9 : vector<1x32xbf16> to vector<16x32xbf16>
    %423 = arith.mulf %406, %422 : vector<16x32xbf16>
    %cst_121 = arith.constant dense<0.000000e+00> : vector<8x32xf32>
    %424 = tpu.matmul %421, %423, %cst_121 {dimension_numbers = #tpu.dot_dimension_numbers<[1], [0], [0], [1], [0, 0, 1, 1], [], []>} : vector<8x16xbf16>, vector<16x32xbf16>, vector<8x32xf32> -> vector<8x32xf32>
    %425 = vector.broadcast %18 : vector<1x32xbf16> to vector<8x32xbf16>
    %426 = arith.mulf %402, %425 : vector<8x32xbf16>
    %cst_122 = arith.constant dense<0.000000e+00> : vector<8x16xf32>
    %427 = tpu.matmul %426, %404, %cst_122 {dimension_numbers = #tpu.dot_dimension_numbers<[1], [1], [0], [0], [0, 0, 1, 0], [], []>} : vector<8x32xbf16>, vector<16x32xbf16>, vector<8x16xf32> -> vector<8x16xf32>
    %428 = arith.addf %427, %62 : vector<8x16xf32>
    %cst_123 = arith.constant dense<0xFF800000> : vector<8xf32>
    %429 = vector.multi_reduction <maximumf>, %428, %cst_123 [1] : vector<8x16xf32> to vector<8xf32>
    %430 = vector.shape_cast %429 : vector<8xf32> to vector<8x1xf32>
    %431 = vector.broadcast %430 : vector<8x1xf32> to vector<8x16xf32>
    %432 = arith.subf %428, %431 : vector<8x16xf32>
    %433 = math.exp %432 : vector<8x16xf32>
    %cst_124 = arith.constant dense<0.000000e+00> : vector<8xf32>
    %434 = vector.multi_reduction <add>, %433, %cst_124 [1] : vector<8x16xf32> to vector<8xf32>
    %435 = vector.shape_cast %434 : vector<8xf32> to vector<8x1xf32>
    %436 = tpu.reciprocal %435 {approx = true} : vector<8x1xf32> -> vector<8x1xf32>
    %437 = vector.broadcast %436 : vector<8x1xf32> to vector<8x16xf32>
    %438 = arith.mulf %433, %437 : vector<8x16xf32>
    %439 = arith.truncf %438 : vector<8x16xf32> to vector<8x16xbf16>
    %440 = vector.broadcast %18 : vector<1x32xbf16> to vector<16x32xbf16>
    %441 = arith.mulf %406, %440 : vector<16x32xbf16>
    %cst_125 = arith.constant dense<0.000000e+00> : vector<8x32xf32>
    %442 = tpu.matmul %439, %441, %cst_125 {dimension_numbers = #tpu.dot_dimension_numbers<[1], [0], [0], [1], [0, 0, 1, 1], [], []>} : vector<8x16xbf16>, vector<16x32xbf16>, vector<8x32xf32> -> vector<8x32xf32>
    %443 = arith.addf %424, %442 : vector<8x32xf32>
    %444 = vector.broadcast %27 : vector<1x32xbf16> to vector<8x32xbf16>
    %445 = arith.mulf %402, %444 : vector<8x32xbf16>
    %cst_126 = arith.constant dense<0.000000e+00> : vector<8x16xf32>
    %446 = tpu.matmul %445, %404, %cst_126 {dimension_numbers = #tpu.dot_dimension_numbers<[1], [1], [0], [0], [0, 0, 1, 0], [], []>} : vector<8x32xbf16>, vector<16x32xbf16>, vector<8x16xf32> -> vector<8x16xf32>
    %447 = arith.addf %446, %62 : vector<8x16xf32>
    %cst_127 = arith.constant dense<0xFF800000> : vector<8xf32>
    %448 = vector.multi_reduction <maximumf>, %447, %cst_127 [1] : vector<8x16xf32> to vector<8xf32>
    %449 = vector.shape_cast %448 : vector<8xf32> to vector<8x1xf32>
    %450 = vector.broadcast %449 : vector<8x1xf32> to vector<8x16xf32>
    %451 = arith.subf %447, %450 : vector<8x16xf32>
    %452 = math.exp %451 : vector<8x16xf32>
    %cst_128 = arith.constant dense<0.000000e+00> : vector<8xf32>
    %453 = vector.multi_reduction <add>, %452, %cst_128 [1] : vector<8x16xf32> to vector<8xf32>
    %454 = vector.shape_cast %453 : vector<8xf32> to vector<8x1xf32>
    %455 = tpu.reciprocal %454 {approx = true} : vector<8x1xf32> -> vector<8x1xf32>
    %456 = vector.broadcast %455 : vector<8x1xf32> to vector<8x16xf32>
    %457 = arith.mulf %452, %456 : vector<8x16xf32>
    %458 = arith.truncf %457 : vector<8x16xf32> to vector<8x16xbf16>
    %459 = vector.broadcast %27 : vector<1x32xbf16> to vector<16x32xbf16>
    %460 = arith.mulf %406, %459 : vector<16x32xbf16>
    %cst_129 = arith.constant dense<0.000000e+00> : vector<8x32xf32>
    %461 = tpu.matmul %458, %460, %cst_129 {dimension_numbers = #tpu.dot_dimension_numbers<[1], [0], [0], [1], [0, 0, 1, 1], [], []>} : vector<8x16xbf16>, vector<16x32xbf16>, vector<8x32xf32> -> vector<8x32xf32>
    %462 = arith.addf %443, %461 : vector<8x32xf32>
    %463 = vector.broadcast %36 : vector<1x32xbf16> to vector<8x32xbf16>
    %464 = arith.mulf %402, %463 : vector<8x32xbf16>
    %cst_130 = arith.constant dense<0.000000e+00> : vector<8x16xf32>
    %465 = tpu.matmul %464, %404, %cst_130 {dimension_numbers = #tpu.dot_dimension_numbers<[1], [1], [0], [0], [0, 0, 1, 0], [], []>} : vector<8x32xbf16>, vector<16x32xbf16>, vector<8x16xf32> -> vector<8x16xf32>
    %466 = arith.addf %465, %62 : vector<8x16xf32>
    %cst_131 = arith.constant dense<0xFF800000> : vector<8xf32>
    %467 = vector.multi_reduction <maximumf>, %466, %cst_131 [1] : vector<8x16xf32> to vector<8xf32>
    %468 = vector.shape_cast %467 : vector<8xf32> to vector<8x1xf32>
    %469 = vector.broadcast %468 : vector<8x1xf32> to vector<8x16xf32>
    %470 = arith.subf %466, %469 : vector<8x16xf32>
    %471 = math.exp %470 : vector<8x16xf32>
    %cst_132 = arith.constant dense<0.000000e+00> : vector<8xf32>
    %472 = vector.multi_reduction <add>, %471, %cst_132 [1] : vector<8x16xf32> to vector<8xf32>
    %473 = vector.shape_cast %472 : vector<8xf32> to vector<8x1xf32>
    %474 = tpu.reciprocal %473 {approx = true} : vector<8x1xf32> -> vector<8x1xf32>
    %475 = vector.broadcast %474 : vector<8x1xf32> to vector<8x16xf32>
    %476 = arith.mulf %471, %475 : vector<8x16xf32>
    %477 = arith.truncf %476 : vector<8x16xf32> to vector<8x16xbf16>
    %478 = vector.broadcast %36 : vector<1x32xbf16> to vector<16x32xbf16>
    %479 = arith.mulf %406, %478 : vector<16x32xbf16>
    %cst_133 = arith.constant dense<0.000000e+00> : vector<8x32xf32>
    %480 = tpu.matmul %477, %479, %cst_133 {dimension_numbers = #tpu.dot_dimension_numbers<[1], [0], [0], [1], [0, 0, 1, 1], [], []>} : vector<8x16xbf16>, vector<16x32xbf16>, vector<8x32xf32> -> vector<8x32xf32>
    %481 = arith.addf %462, %480 : vector<8x32xf32>
    %482 = arith.truncf %481 : vector<8x32xf32> to vector<8x32xbf16>
    %cst_134 = arith.constant dense<0.000000e+00> : vector<8x32xf32>
    %483 = tpu.matmul %482, %388, %cst_134 {dimension_numbers = #tpu.dot_dimension_numbers<[1], [0], [0], [1], [0, 0, 1, 1], [], []>} : vector<8x32xbf16>, vector<32x32xbf16>, vector<8x32xf32> -> vector<8x32xf32>
    %484 = vector.broadcast %390 : vector<1x32xf32> to vector<8x32xf32>
    %485 = arith.addf %483, %484 : vector<8x32xf32>
    %486 = arith.addf %384, %485 : vector<8x32xf32>
    %c600 = arith.constant 600 : index
    %c0_135 = arith.constant 0 : index
    %487 = vector.load %arg1[%c600, %c0_135] : memref<632x128xbf16, #tpu.memory_space<vmem>>, vector<1x32xbf16>
    %488 = arith.extf %487 : vector<1x32xbf16> to vector<1x32xf32>
    %c608 = arith.constant 608 : index
    %c0_136 = arith.constant 0 : index
    %489 = vector.load %arg1[%c608, %c0_136] : memref<632x128xbf16, #tpu.memory_space<vmem>>, vector<1x32xbf16>
    %490 = arith.extf %489 : vector<1x32xbf16> to vector<1x32xf32>
    %cst_137 = arith.constant dense<0.000000e+00> : vector<8xf32>
    %491 = vector.multi_reduction <add>, %486, %cst_137 [1] : vector<8x32xf32> to vector<8xf32>
    %492 = vector.shape_cast %491 : vector<8xf32> to vector<8x1xf32>
    %cst_138 = arith.constant 3.200000e+01 : f32
    %493 = vector.broadcast %cst_138 : f32 to vector<8x1xf32>
    %494 = arith.divf %492, %493 : vector<8x1xf32>
    %495 = vector.broadcast %494 : vector<8x1xf32> to vector<8x32xf32>
    %496 = arith.subf %486, %495 : vector<8x32xf32>
    %497 = arith.mulf %496, %496 : vector<8x32xf32>
    %cst_139 = arith.constant dense<0.000000e+00> : vector<8xf32>
    %498 = vector.multi_reduction <add>, %497, %cst_139 [1] : vector<8x32xf32> to vector<8xf32>
    %499 = vector.shape_cast %498 : vector<8xf32> to vector<8x1xf32>
    %cst_140 = arith.constant 3.200000e+01 : f32
    %500 = vector.broadcast %cst_140 : f32 to vector<8x1xf32>
    %501 = arith.divf %499, %500 : vector<8x1xf32>
    %502 = vector.broadcast %494 : vector<8x1xf32> to vector<8x32xf32>
    %503 = arith.subf %486, %502 : vector<8x32xf32>
    %cst_141 = arith.constant 9.99999974E-6 : f32
    %504 = vector.broadcast %cst_141 : f32 to vector<8x1xf32>
    %505 = arith.addf %501, %504 : vector<8x1xf32>
    %506 = math.rsqrt %505 : vector<8x1xf32>
    %507 = vector.broadcast %506 : vector<8x1xf32> to vector<8x32xf32>
    %508 = arith.mulf %503, %507 : vector<8x32xf32>
    %509 = vector.broadcast %488 : vector<1x32xf32> to vector<8x32xf32>
    %510 = arith.mulf %508, %509 : vector<8x32xf32>
    %511 = vector.broadcast %490 : vector<1x32xf32> to vector<8x32xf32>
    %512 = arith.addf %510, %511 : vector<8x32xf32>
    %c472 = arith.constant 472 : index
    %c0_142 = arith.constant 0 : index
    %513 = vector.load %arg1[%c472, %c0_142] : memref<632x128xbf16, #tpu.memory_space<vmem>>, vector<32x64xbf16>
    %c504 = arith.constant 504 : index
    %c0_143 = arith.constant 0 : index
    %514 = vector.load %arg1[%c504, %c0_143] : memref<632x128xbf16, #tpu.memory_space<vmem>>, vector<1x64xbf16>
    %515 = arith.extf %514 : vector<1x64xbf16> to vector<1x64xf32>
    %c512 = arith.constant 512 : index
    %c0_144 = arith.constant 0 : index
    %516 = vector.load %arg1[%c512, %c0_144] : memref<632x128xbf16, #tpu.memory_space<vmem>>, vector<64x32xbf16>
    %c576 = arith.constant 576 : index
    %c0_145 = arith.constant 0 : index
    %517 = vector.load %arg1[%c576, %c0_145] : memref<632x128xbf16, #tpu.memory_space<vmem>>, vector<1x32xbf16>
    %518 = arith.extf %517 : vector<1x32xbf16> to vector<1x32xf32>
    %519 = arith.truncf %512 : vector<8x32xf32> to vector<8x32xbf16>
    %cst_146 = arith.constant dense<0.000000e+00> : vector<8x64xf32>
    %520 = tpu.matmul %519, %513, %cst_146 {dimension_numbers = #tpu.dot_dimension_numbers<[1], [0], [0], [1], [0, 0, 1, 1], [], []>} : vector<8x32xbf16>, vector<32x64xbf16>, vector<8x64xf32> -> vector<8x64xf32>
    %521 = vector.broadcast %515 : vector<1x64xf32> to vector<8x64xf32>
    %522 = arith.addf %520, %521 : vector<8x64xf32>
    %cst_147 = arith.constant 0.000000e+00 : f32
    %523 = vector.broadcast %cst_147 : f32 to vector<8x64xf32>
    %524 = arith.maximumf %522, %523 : vector<8x64xf32>
    %525 = arith.truncf %524 : vector<8x64xf32> to vector<8x64xbf16>
    %cst_148 = arith.constant dense<0.000000e+00> : vector<8x32xf32>
    %526 = tpu.matmul %525, %516, %cst_148 {dimension_numbers = #tpu.dot_dimension_numbers<[1], [0], [0], [1], [0, 0, 1, 1], [], []>} : vector<8x64xbf16>, vector<64x32xbf16>, vector<8x32xf32> -> vector<8x32xf32>
    %527 = vector.broadcast %518 : vector<1x32xf32> to vector<8x32xf32>
    %528 = arith.addf %526, %527 : vector<8x32xf32>
    %529 = arith.addf %512, %528 : vector<8x32xf32>
    %c616 = arith.constant 616 : index
    %c0_149 = arith.constant 0 : index
    %530 = vector.load %arg1[%c616, %c0_149] : memref<632x128xbf16, #tpu.memory_space<vmem>>, vector<1x32xbf16>
    %531 = arith.extf %530 : vector<1x32xbf16> to vector<1x32xf32>
    %c624 = arith.constant 624 : index
    %c0_150 = arith.constant 0 : index
    %532 = vector.load %arg1[%c624, %c0_150] : memref<632x128xbf16, #tpu.memory_space<vmem>>, vector<1x32xbf16>
    %533 = arith.extf %532 : vector<1x32xbf16> to vector<1x32xf32>
    %cst_151 = arith.constant dense<0.000000e+00> : vector<8xf32>
    %534 = vector.multi_reduction <add>, %529, %cst_151 [1] : vector<8x32xf32> to vector<8xf32>
    %535 = vector.shape_cast %534 : vector<8xf32> to vector<8x1xf32>
    %cst_152 = arith.constant 3.200000e+01 : f32
    %536 = vector.broadcast %cst_152 : f32 to vector<8x1xf32>
    %537 = arith.divf %535, %536 : vector<8x1xf32>
    %538 = vector.broadcast %537 : vector<8x1xf32> to vector<8x32xf32>
    %539 = arith.subf %529, %538 : vector<8x32xf32>
    %540 = arith.mulf %539, %539 : vector<8x32xf32>
    %cst_153 = arith.constant dense<0.000000e+00> : vector<8xf32>
    %541 = vector.multi_reduction <add>, %540, %cst_153 [1] : vector<8x32xf32> to vector<8xf32>
    %542 = vector.shape_cast %541 : vector<8xf32> to vector<8x1xf32>
    %cst_154 = arith.constant 3.200000e+01 : f32
    %543 = vector.broadcast %cst_154 : f32 to vector<8x1xf32>
    %544 = arith.divf %542, %543 : vector<8x1xf32>
    %545 = vector.broadcast %537 : vector<8x1xf32> to vector<8x32xf32>
    %546 = arith.subf %529, %545 : vector<8x32xf32>
    %cst_155 = arith.constant 9.99999974E-6 : f32
    %547 = vector.broadcast %cst_155 : f32 to vector<8x1xf32>
    %548 = arith.addf %544, %547 : vector<8x1xf32>
    %549 = math.rsqrt %548 : vector<8x1xf32>
    %550 = vector.broadcast %549 : vector<8x1xf32> to vector<8x32xf32>
    %551 = arith.mulf %546, %550 : vector<8x32xf32>
    %552 = vector.broadcast %531 : vector<1x32xf32> to vector<8x32xf32>
    %553 = arith.mulf %551, %552 : vector<8x32xf32>
    %554 = vector.broadcast %533 : vector<1x32xf32> to vector<8x32xf32>
    %555 = arith.addf %553, %554 : vector<8x32xf32>
    %c296 = arith.constant 296 : index
    %c0_156 = arith.constant 0 : index
    %556 = vector.load %arg1[%c296, %c0_156] : memref<632x128xbf16, #tpu.memory_space<vmem>>, vector<1x32xbf16>
    %557 = arith.truncf %555 : vector<8x32xf32> to vector<8x32xbf16>
    %cst_157 = arith.constant dense<0.000000e+00> : vector<1x8xf32>
    %558 = tpu.matmul %556, %557, %cst_157 {dimension_numbers = #tpu.dot_dimension_numbers<[1], [1], [0], [0], [0, 0, 1, 0], [], []>} : vector<1x32xbf16>, vector<8x32xbf16>, vector<1x8xf32> -> vector<1x8xf32>
    %c304 = arith.constant 304 : index
    %c0_158 = arith.constant 0 : index
    %559 = vector.load %arg1[%c304, %c0_158] : memref<632x128xbf16, #tpu.memory_space<vmem>>, vector<1x1xbf16>
    %560 = arith.extf %559 : vector<1x1xbf16> to vector<1x1xf32>
    %561 = vector.broadcast %560 : vector<1x1xf32> to vector<1x8xf32>
    %562 = arith.addf %558, %561 : vector<1x8xf32>
    %c0_159 = arith.constant 0 : index
    %c0_160 = arith.constant 0 : index
    %563 = vector.load %arg2[%c0_159, %c0_160] : memref<1x8xf32, #tpu.memory_space<vmem>>, vector<1x8xf32>
    tpu.vector_store %arg2[%c0_159, %c0_160], %562 {strides = array<i32>} : memref<1x8xf32, #tpu.memory_space<vmem>>, vector<1x8xf32>,
    return
  }
}

</mosaic_0001>

<bundles_post_ra>
// kernel: transformer_forward.1
= control target key start
LH: loop header
LB: loop body
LE: loop exit
PB: predicated region body
PF: predicated region fallthrough
CT: control target
= control target key end

     0   :  { %v12_v0 = vlaneseq  ;;  %v3046_v1 = vmov 0.0   ;;  %vm3047_vm0 = vmmov 0   ;;  %vm125_vm1 = vcmask 261120   ;;  %s3049_s29 = smov 96   ;;  %s3051_s6 = smov 64   ;;  %s3709_s1 = inlined_call_operand.vmem [shape: bf16[632,128], index: 1, kind: input, shape index: {}]   ;;  %s3710_s0 = inlined_call_operand.vmem [shape: f32[96,128], index: 0, kind: input, shape index: {}]   ;;  %s3711_s2 = inlined_call_operand.vmem [shape: f32[1,8], index: 2, kind: output, shape index: {}]  }
   0x1   :  { %2679 = vmatprep.subr.bf16.mxu0 %v3046_v1  ;;  %v2941_v2 = vld [vmem:[%s3709_s1 + $0x24] sm:$0xff]   ;;  %2683 = vmatprep.mubr.msk.bf16.mxu0 %vm3047_vm0, %v3046_v1  ;;  %v2942_v4 = vld [vmem:[%s3709_s1 + $0x1c] sm:$0xff]   ;;  %v100_v23 = vld [vmem:[%s3709_s1 + $0x2c] sm:$0x1]  ;;  %v3048_v32 = vmov 0   ;;  %vm225_vm8 = vcmask 130048  }
   0x2   :  { %v3073_v3 = vshrl.u32 %v12_v0, 7  ;;  %2687 = vmatprep.subr.bf16.mxu1 %v3046_v1  ;;  %2689 = vmatprep.mubr.msk.bf16.mxu1 %vm3047_vm0, %v3046_v1  ;;  %v76_v5 = vld [vmem:[%s3709_s1] sm:$0x1]  ;;  %v84_v9 = vld [vmem:[%s3709_s1 + $0x4] sm:$0x1]  ;;  %v75_v10 = vld [vmem:[%s3710_s0 + $0x8] sm:$0xff]  ;;  %v101_v24 = vunpack.c.l.bf16 %v100_v23 }
   0x3   :  { %2680 = vmatpush3.bf16.msra.mxu0 %v2941_v2  ;;  %v74_v6 = vld [vmem:[%s3710_s0] sm:$0xff]  ;;  %v77_v7 = vunpack.c.l.bf16 %v76_v5  ;;  %v85_v11 = vunpack.c.l.bf16 %v84_v9  ;;  %v93_v15 = vld [vmem:[%s3710_s0 + $0x28] sm:$0xff]  ;;  %2939 = vset.pattern.permute.xlu0 %v3048_v32  ;;  %v34_v38 = vld [vmem:[%s3710_s0 + $0x38] sm:$0xff]  ;;  %v3131_v39 = vand.u32 127, %v12_v0  ;;  %v3050_v51 = vmov -1e+30  }
   0x4   :  { %2681 = vmatprep.subr.bf16.mxu0 %v3046_v1  ;;  %v3089_v8 = vsub.s32 0, %v3073_v3  ;;  %v92_v14 = vld [vmem:[%s3710_s0 + $0x20] sm:$0xff]  ;;  %2940 = vset.pattern.permute.xlu1 %v3048_v32  ;;  %v2524_v48 = vld [vmem:[%s3710_s0 + $0x48] ss:$0 sm:$0xff]  ;;  %vm883_vm15 = vcmask 523264  }
   0x5   :  { %v35_v30 = vld [vmem:[%s3710_s0 + $0x40] sm:$0xff]  ;;  %vm19_vm2 = vcmp.ge.s32.totalorder %v3131_v39, 8  ;;  %vm20_vm3 = vcmp.lt.s32.totalorder %v3131_v39, 16  ;;  %vm15_vm4 = vcmp.lt.s32.totalorder %v3131_v39, 8  ;;  %vm24_vm9 = vcmp.ge.s32.totalorder %v3131_v39, 16 }
   0x6   :  { %v81_v12 = vrot.slane %v77_v7, %v3089_v8  ;;  %v89_v13 = vrot.slane %v85_v11, %v3089_v8  ;;  %v112_v25 = vrot.slane %v101_v24, %v3089_v8  ;;  %46 = vperm.xlu1 %2940, %v35_v30   ;;  %vm21_vm5 = vmand %vm19_vm2, %vm20_vm3  ;;  %v17_v41 = vsel %vm15_vm4, 1.0, %v3046_v1 }
   0x7   :  { %2682 = vmatpush3.bf16.msra.mxu0 %v2942_v4  ;;  %v22_v42 = vsel %vm21_vm5, 1.0, %v3046_v1  ;;  %v3143_v44 = vpack.c.bf16 %v17_v41, %v17_v41  ;;  %vm25_vm10 = vcmp.lt.s32.totalorder %v3131_v39, 24  ;;  %vm29_vm12 = vcmp.ge.s32.totalorder %v3131_v39, 24 }
   0x8   :  { %v82_v16 = vmul.f32 %v81_v12, %v74_v6  ;;  %v83_v17 = vmul.f32 %v81_v12, %v75_v10  ;;  %2693 = vmatprep.subr.bf16.mxu0 %v3046_v1  ;;  %v3145_v45 = vpack.c.bf16 %v22_v42, %v22_v42  ;;  %vm26_vm11 = vmand %vm24_vm9, %vm25_vm10  ;;  %vm30_vm13 = vcmp.lt.s32.totalorder %v3131_v39, 32 }
   0x9   :  { %vm31_vm14 = vmand %vm29_vm12, %vm30_vm13  ;;  %vm69_vm2 = vcmp.ge.s32.totalorder %v3073_v3, %v3131_v39  ;;  %vm1182_vm5 = vcmask 64512  }
   0xa   :  { %v90_v18 = vadd.f32 %v89_v13, %v82_v16  ;;  %v91_v19 = vadd.f32 %v89_v13, %v83_v17 }
   0xc   :  { %v3106_v20 = vadd.f32 %v92_v14, %v90_v18  ;;  %v3108_v21 = vadd.f32 %v93_v15, %v91_v19 }
   0xe   :  { %v108_v22 = vpack.c.bf16 %v3108_v21, %v3106_v20 }
  0x10   :  { %2684 = vmatmul.mubr.msk.bf16.vlgmr.msra.gmra.mxu0 %vm125_vm1, %v108_v22 }
  0x11   :  { %2695 = vmatprep.mubr.msk.bf16.mxu0 %vm3047_vm0, %v3046_v1 }
  0x81   :  { %v47_v50 = vpop.permute.xlu1 %46 }
  0x82   :  { %vm54_vm7 = vcmp.eq.f32.partialorder %v47_v50, %v2524_v48 }
  0x83   :  { %v3167_v58 = vsel %vm54_vm7, 0.0, %v3050_v51 }
  0xd0   :  { %v163_v26 = vpop.f32.mrf.mxu0 }
  0xd1   :  { %v164_v28 = vadd.f32 %v163_v26, %v112_v25 }
  0xd2   :  { %v2685_v27 = vpop.f32.mrf.mxu0 }
  0xd3   :  { %v170_v34 = vmul.f32 0.35355338, %v164_v28 }
  0xd4   :  { %v166_v29 = vpop.f32.mrf.mxu0 }
  0xd5   :  { %v167_v31 = vadd.f32 %v166_v29, %v112_v25 }
  0xd6   :  { %v2686_v33 = vpop.f32.mrf.mxu0 }
  0xd7   :  { %v171_v35 = vmul.f32 0.35355338, %v167_v31  ;;  %v3122_v36 = vpack.c.bf16 %v167_v31, %v164_v28  ;;  %v27_v31 = vsel %vm26_vm11, 1.0, %v3046_v1 }
  0xd8   :  { %v3202_v32 = vpack.c.bf16 %v27_v31, %v27_v31 }
  0xd9   :  { %v3124_v37 = vpack.c.bf16 %v171_v35, %v170_v34  ;;  %176 = vrot.lane.b32.xlu0 %v3122_v36, %s3049_s29  ;;  %v32_v34 = vsel %vm31_vm14, 1.0, %v3046_v1 }
  0xda   :  { %v3211_v35 = vpack.c.bf16 %v32_v34, %v32_v34 }
  0xdb   :  { %v174_v46 = vmul.bf16 %v3124_v37, %v3143_v44  ;;  %v254_v47 = vmul.bf16 %v3124_v37, %v3145_v45  ;;  %v423_v33 = vmul.bf16 %v3124_v37, %v3202_v32 }
  0xdd   :  { %41 = vperm.xlu0 %2939, %v34_v38   ;;  %v546_v38 = vmul.bf16 %v3124_v37, %v3211_v35 }
 0x14b   :  { %v177_v40 = vpop.permute.xlu0 %176 }
 0x14c   :  { %v3139_v43 = vsel %vm125_vm1, %v177_v40, 0 }
 0x14d   :  { %2688 = vmatpush3.bf16.xpose.msra.mxu1 %v3139_v43  ;;  %2694 = vmatpush3.bf16.xpose.msra.mxu0 %v3139_v43 }
 0x14e   :  { %2699 = vmatprep.subr.bf16.mxu1 %v3046_v1  ;;  %2705 = vmatprep.subr.bf16.mxu0 %v3046_v1 }
 0x154   :  { %2690 = vmatmul.mubr.msk.bf16.vlgmr.msra.gmra.mxu1 %vm125_vm1, %v174_v46  ;;  %2696 = vmatmul.mubr.msk.bf16.vlgmr.msra.gmra.mxu0 %vm125_vm1, %v254_v47 }
 0x155   :  { %2701 = vmatprep.mubr.msk.bf16.mxu1 %vm3047_vm0, %v3046_v1  ;;  %2707 = vmatprep.mubr.msk.bf16.mxu0 %vm3047_vm0, %v3046_v1 }
 0x158   :  { %v42_v49 = vpop.permute.xlu0 %41 }
 0x159   :  { %vm53_vm6 = vcmp.eq.f32.partialorder %v42_v49, %v2524_v48 }
 0x15a   :  { %v3163_v52 = vsel %vm53_vm6, 0.0, %v3050_v51  ;;  %vm1259_vm6 = vcmask 1043456  }
 0x214   :  { %v218_v53 = vpop.f32.mrf.mxu1  ;;  %v292_v54 = vpop.f32.mrf.mxu0 }
 0x215   :  { %v293_v55 = vadd.f32 %v292_v54, %v3163_v52  ;;  %v3175_v4 = vadd.f32 %v218_v53, %v3163_v52 }
 0x216   :  { %v2691_v56 = vpop.f32.mrf.mxu1  ;;  %v2697_v57 = vpop.f32.mrf.mxu0 }
 0x217   :  { %v299_v59 = vsel %vm225_vm8, %v293_v55, -inf  ;;  %v226_v5 = vsel %vm225_vm8, %v3175_v4, -inf }
 0x218   :  { %v221_v60 = vpop.f32.mrf.mxu1  ;;  %v295_v61 = vpop.f32.mrf.mxu0  ;;  %300 = vmax.xlane.f32.xlu1 %v299_v59 }
 0x219   :  { %v296_v62 = vadd.f32 %v295_v61, %v3167_v58  ;;  %v3187_v19 = vadd.f32 %v221_v60, %v3167_v58 }
 0x21a   :  { %v2692_v63 = vpop.f32.mrf.mxu1  ;;  %v2698_v0 = vpop.f32.mrf.mxu0 }
 0x21b   :  { %v302_v2 = vsel %vm225_vm8, %v296_v62, -inf  ;;  %v229_v22 = vsel %vm225_vm8, %v3187_v19, -inf }
 0x21c   :  { %303 = vmax.xlane.f32.xlu0 %v302_v2 }
 0x229   :  { %323 = vrot.lane.b32.xlu1 %v3145_v45, %s3051_s6 }
 0x24d   :  { %227 = vmax.xlane.f32.xlu1 %v226_v5 }
 0x2a1   :  { %v301_v6 = vpop.xlane.xlu1 %300 }
 0x2a2   :  { %v305_v7 = vsub.f32 %v293_v55, %v301_v6 }
 0x2a4   :  { %v307_v9 = vmul.f32 1.442695, %v305_v7 }
 0x2a5   :  { %v304_v10 = vpop.xlane.xlu0 %303  ;;  %v3181_v17 = vpop.permute.xlu1 %323 }
 0x2a6   :  { %2967 = vpow2.f32 %v307_v9  ;;  %v306_v11 = vsub.f32 %v296_v62, %v304_v10  ;;  %v326_v18 = vmul.bf16 %v3181_v17, %v3122_v36 }
 0x2a8   :  { %v309_v12 = vmul.f32 1.442695, %v306_v11 }
 0x2aa   :  { %2969 = vpow2.f32 %v309_v12 }
 0x2b3   :  { %v2968_v13 = vpop.eup %2967 }
 0x2b4   :  { %v311_v14 = vsel %vm225_vm8, %v2968_v13, 0.0 }
 0x2b5   :  { %312 = vadd.xlane.f32.xlu0 %v311_v14 }
 0x2b7   :  { %v2970_v15 = vpop.eup %2969 }
 0x2b8   :  { %v314_v16 = vsel %vm225_vm8, %v2970_v15, 0.0 }
 0x2b9   :  { %315 = vadd.xlane.f32.xlu0 %v314_v16 }
 0x2cf   :  { %328 = vrot.lane.b32.xlu0 %v326_v18, %s3051_s6 }
 0x2ee   :  { %230 = vmax.xlane.f32.xlu0 %v229_v22 }
 0x33e   :  { %v313_v23 = vpop.xlane.xlu0 %312 }
 0x33f   :  { %2971 = vrcp.f32 %v313_v23 }
 0x342   :  { %v316_v24 = vpop.xlane.xlu0 %315 }
 0x343   :  { %2973 = vrcp.f32 %v316_v24 }
 0x346   :  { %v329_v25 = vpop.permute.xlu0 %328 }
 0x347   :  { %2700 = vmatpush3.bf16.msra.mxu1 %v329_v25 }
 0x348   :  { %2711 = vmatprep.subr.bf16.mxu1 %v3046_v1 }
 0x34c   :  { %v2972_v26 = vpop.eup %2971 }
 0x34d   :  { %v319_v28 = vmul.f32 %v2972_v26, %v2968_v13 }
 0x350   :  { %v2974_v27 = vpop.eup %2973 }
 0x351   :  { %v320_v29 = vmul.f32 %v2974_v27, %v2970_v15 }
 0x353   :  { %v321_v30 = vpack.c.bf16 %v320_v29, %v319_v28 }
 0x355   :  { %2702 = vmatmul.mubr.msk.bf16.vlgmr.msra.gmra.mxu1 %vm225_vm8, %v321_v30 }
 0x356   :  { %2712 = vmatpush3.bf16.xpose.msra.mxu1 %v3139_v43  ;;  %2713 = vmatprep.mubr.msk.bf16.mxu1 %vm3047_vm0, %v3046_v1 }
 0x357   :  { %2723 = vmatprep.subr.bf16.mxu1 %v3046_v1 }
 0x35d   :  { %2714 = vmatmul.mubr.msk.bf16.vlgmr.msra.gmra.mxu1 %vm125_vm1, %v423_v33 }
 0x35e   :  { %2724 = vmatpush3.bf16.xpose.msra.mxu1 %v3139_v43  ;;  %2725 = vmatprep.mubr.msk.bf16.mxu1 %vm3047_vm0, %v3046_v1 }
 0x35f   :  { %2735 = vmatprep.subr.bf16.mxu1 %v3046_v1 }
 0x365   :  { %2726 = vmatmul.mubr.msk.bf16.vlgmr.msra.gmra.mxu1 %vm125_vm1, %v546_v38 }
 0x366   :  { %2739 = vmatprep.mubr.msk.bf16.mxu1 %vm3047_vm0, %v3046_v1 }
 0x377   :  { %v231_v0 = vpop.xlane.xlu0 %230 }
 0x378   :  { %v233_v5 = vsub.f32 %v3187_v19, %v231_v0 }
 0x37a   :  { %v236_v6 = vmul.f32 1.442695, %v233_v5 }
 0x415   :  { %v3219_v40 = vpop.f32.mrf.mxu1 }
 0x417   :  { %v2703_v41 = vpop.f32.mrf.mxu1 }
 0x419   :  { %v3221_v42 = vpop.f32.mrf.mxu1 }
 0x41b   :  { %v2704_v43 = vpop.f32.mrf.mxu1 }
 0x41d   :  { %v461_v46 = vpop.f32.mrf.mxu1 }
 0x41e   :  { %v462_v47 = vadd.f32 %v461_v46, %v3163_v52 }
 0x41f   :  { %v2715_v48 = vpop.f32.mrf.mxu1 }
 0x420   :  { %v468_v49 = vsel %vm225_vm8, %v462_v47, -inf }
 0x421   :  { %469 = vmax.xlane.f32.xlu1 %v468_v49  ;;  %v464_v50 = vpop.f32.mrf.mxu1 }
 0x422   :  { %v465_v37 = vadd.f32 %v464_v50, %v3167_v58 }
 0x423   :  { %v2716_v53 = vpop.f32.mrf.mxu1 }
 0x424   :  { %v471_v54 = vsel %vm225_vm8, %v465_v37, -inf }
 0x425   :  { %472 = vmax.xlane.f32.xlu1 %v471_v54  ;;  %v584_v55 = vpop.f32.mrf.mxu1 }
 0x426   :  { %v585_v56 = vadd.f32 %v584_v55, %v3163_v52  ;;  %v228_v52 = vpop.xlane.xlu1 %227 }
 0x427   :  { %v2727_v57 = vpop.f32.mrf.mxu1  ;;  %v232_v2 = vsub.f32 %v3175_v4, %v228_v52 }
 0x428   :  { %v591_v59 = vsel %vm225_vm8, %v585_v56, -inf }
 0x429   :  { %592 = vmax.xlane.f32.xlu1 %v591_v59  ;;  %v587_v60 = vpop.f32.mrf.mxu1 }
 0x42a   :  { %v588_v61 = vadd.f32 %v587_v60, %v3167_v58  ;;  %v234_v58 = vmul.f32 1.442695, %v232_v2 }
 0x42b   :  { %v2728_v62 = vpop.f32.mrf.mxu1 }
 0x42c   :  { %v594_v63 = vsel %vm225_vm8, %v588_v61, -inf  ;;  %2975 = vpow2.f32 %v234_v58 }
 0x42d   :  { %595 = vmax.xlane.f32.xlu0 %v594_v63  ;;  %2977 = vpow2.f32 %v236_v6 }
 0x439   :  { %v2976_v7 = vpop.eup %2975 }
 0x43a   :  { %250 = vrot.lane.b32.xlu1 %v3143_v44, %s3051_s6  ;;  %v2978_v9 = vpop.eup %2977  ;;  %v238_v10 = vsel %vm225_vm8, %v2976_v7, 0.0 }
 0x43b   :  { %v241_v11 = vsel %vm225_vm8, %v2978_v9, 0.0 }
 0x43e   :  { %615 = vrot.lane.b32.xlu1 %v3211_v35, %s3051_s6 }
 0x443   :  { %492 = vrot.lane.b32.xlu0 %v3202_v32, %s3051_s6 }
 0x462   :  { %239 = vadd.xlane.f32.xlu1 %v238_v10  ;;  %242 = vadd.xlane.f32.xlu0 %v241_v11 }
 0x4aa   :  { %v470_v12 = vpop.xlane.xlu1 %469 }
 0x4ab   :  { %v474_v13 = vsub.f32 %v462_v47, %v470_v12  ;;  %v2943_v12 = vld [vmem:[%s3709_s1 + $0x38] sm:$0xff]  }
 0x4ac   :  { %2736 = vmatpush3.bf16.msra.mxu1 %v2943_v12 }
 0x4ad   :  { %v476_v14 = vmul.f32 1.442695, %v474_v13  ;;  %2737 = vmatprep.subr.bf16.mxu1 %v3046_v1  ;;  %v2944_v13 = vld [vmem:[%s3709_s1 + $0x30] sm:$0xff]  }
 0x4ae   :  { %v473_v15 = vpop.xlane.xlu1 %472 }
 0x4af   :  { %2979 = vpow2.f32 %v476_v14  ;;  %v475_v4 = vsub.f32 %v465_v37, %v473_v15 }
 0x4b0   :  { %2738 = vmatpush3.bf16.msra.mxu1 %v2944_v13 }
 0x4b1   :  { %v478_v16 = vmul.f32 1.442695, %v475_v4  ;;  %2751 = vmatprep.subr.bf16.mxu1 %v3046_v1 }
 0x4b2   :  { %v593_v18 = vpop.xlane.xlu1 %592 }
 0x4b3   :  { %2981 = vpow2.f32 %v478_v16  ;;  %v597_v19 = vsub.f32 %v585_v56, %v593_v18 }
 0x4b5   :  { %v599_v22 = vmul.f32 1.442695, %v597_v19 }
 0x4b6   :  { %v596_v29 = vpop.xlane.xlu0 %595  ;;  %v3249_v33 = vpop.permute.xlu1 %250 }
 0x4b7   :  { %2983 = vpow2.f32 %v599_v22  ;;  %v253_v34 = vmul.bf16 %v3249_v33, %v3122_v36  ;;  %v598_v38 = vsub.f32 %v588_v61, %v596_v29 }
 0x4b9   :  { %v601_v41 = vmul.f32 1.442695, %v598_v38 }
 0x4ba   :  { %v3244_v30 = vpop.permute.xlu0 %492  ;;  %v3255_v47 = vpop.permute.xlu1 %615 }
 0x4bb   :  { %v495_v31 = vmul.bf16 %v3244_v30, %v3122_v36  ;;  %2985 = vpow2.f32 %v601_v41  ;;  %v618_v48 = vmul.bf16 %v3255_v47, %v3122_v36 }
 0x4bc   :  { %v2980_v23 = vpop.eup %2979 }
 0x4bd   :  { %v480_v24 = vsel %vm225_vm8, %v2980_v23, 0.0 }
 0x4be   :  { %481 = vadd.xlane.f32.xlu0 %v480_v24 }
 0x4c0   :  { %v2982_v25 = vpop.eup %2981 }
 0x4c1   :  { %v483_v26 = vsel %vm225_vm8, %v2982_v25, 0.0 }
 0x4c2   :  { %484 = vadd.xlane.f32.xlu1 %v483_v26 }
 0x4c4   :  { %v2984_v27 = vpop.eup %2983 }
 0x4c5   :  { %v603_v28 = vsel %vm225_vm8, %v2984_v27, 0.0 }
 0x4c6   :  { %604 = vadd.xlane.f32.xlu0 %v603_v28 }
 0x4c8   :  { %v2986_v43 = vpop.eup %2985 }
 0x4c9   :  { %v606_v46 = vsel %vm225_vm8, %v2986_v43, 0.0 }
 0x4d3   :  { %497 = vrot.lane.b32.xlu1 %v495_v31, %s3051_s6 }
 0x4dc   :  { %376 = vrot.lane.b32.xlu0 %v253_v34, %s3051_s6 }
 0x4eb   :  { %v240_v49 = vpop.xlane.xlu1 %239  ;;  %v243_v50 = vpop.xlane.xlu0 %242 }
 0x4ec   :  { %2987 = vrcp.f32 %v240_v49 }
 0x4ed   :  { %2989 = vrcp.f32 %v243_v50 }
 0x4f7   :  { %607 = vadd.xlane.f32.xlu1 %v606_v46  ;;  %v106_v46 = vld [vmem:[%s3709_s1 + $0x40] sm:$0x1] }
 0x4f9   :  { %v2988_v54 = vpop.eup %2987 }
 0x4fa   :  { %v2990_v55 = vpop.eup %2989  ;;  %v246_v57 = vmul.f32 %v2988_v54, %v2976_v7 }
 0x4fb   :  { %v247_v59 = vmul.f32 %v2990_v55, %v2978_v9 }
 0x4fd   :  { %v248_v61 = vpack.c.bf16 %v247_v59, %v246_v57 }
 0x508   :  { %620 = vrot.lane.b32.xlu1 %v618_v48, %s3051_s6 }
 0x547   :  { %v482_v37 = vpop.xlane.xlu0 %481 }
 0x548   :  { %2991 = vrcp.f32 %v482_v37 }
 0x54b   :  { %v485_v53 = vpop.xlane.xlu1 %484 }
 0x54c   :  { %2993 = vrcp.f32 %v485_v53 }
 0x54f   :  { %v605_v56 = vpop.xlane.xlu0 %604  ;;  %v498_v62 = vpop.permute.xlu1 %497 }
 0x550   :  { %2995 = vrcp.f32 %v605_v56 }
 0x553   :  { %v377_v60 = vpop.permute.xlu0 %376 }
 0x554   :  { %2706 = vmatpush3.bf16.msra.mxu0 %v377_v60 }
 0x555   :  { %2717 = vmatprep.subr.bf16.mxu0 %v3046_v1  ;;  %v2992_v36 = vpop.eup %2991 }
 0x556   :  { %v488_v52 = vmul.f32 %v2992_v36, %v2980_v23 }
 0x557   :  { %2708 = vmatmul.mubr.msk.bf16.vlgmr.msra.gmra.mxu0 %vm225_vm8, %v248_v61 }
 0x558   :  { %2718 = vmatpush3.bf16.msra.mxu0 %v498_v62  ;;  %2719 = vmatprep.mubr.msk.bf16.mxu0 %vm3047_vm0, %v3046_v1 }
 0x559   :  { %v2994_v63 = vpop.eup %2993  ;;  %2729 = vmatprep.subr.bf16.mxu0 %v3046_v1 }
 0x55a   :  { %v489_v0 = vmul.f32 %v2994_v63, %v2982_v25 }
 0x55c   :  { %v490_v2 = vpack.c.bf16 %v489_v0, %v488_v52 }
 0x55d   :  { %v2996_v6 = vpop.eup %2995 }
 0x55e   :  { %v611_v9 = vmul.f32 %v2996_v6, %v2984_v27  ;;  %v2946_v6 = vld [vmem:[%s3709_s1 + $0x44] sm:$0xff]  }
 0x55f   :  { %2720 = vmatmul.mubr.msk.bf16.vlgmr.msra.gmra.mxu0 %vm225_vm8, %v490_v2 }
 0x560   :  { %2731 = vmatprep.mubr.msk.bf16.mxu0 %vm3047_vm0, %v3046_v1 }
 0x580   :  { %v608_v5 = vpop.xlane.xlu1 %607 }
 0x581   :  { %2997 = vrcp.f32 %v608_v5 }
 0x584   :  { %v621_v58 = vpop.permute.xlu1 %620 }
 0x585   :  { %2730 = vmatpush3.bf16.msra.mxu0 %v621_v58  ;;  %v2945_v58 = vld [vmem:[%s3709_s1 + $0x4c] sm:$0xff]  }
 0x586   :  { %2743 = vmatprep.subr.bf16.mxu0 %v3046_v1 }
 0x58e   :  { %v2998_v7 = vpop.eup %2997 }
 0x58f   :  { %v612_v10 = vmul.f32 %v2998_v7, %v2986_v43  ;;  %v2949_v7 = vld [vmem:[%s3709_s1 + $0x70] sm:$0xff]  }
 0x591   :  { %v613_v11 = vpack.c.bf16 %v612_v10, %v611_v9 }
 0x593   :  { %2732 = vmatmul.mubr.msk.bf16.vlgmr.msra.gmra.mxu0 %vm225_vm8, %v613_v11 }
 0x594   :  { %2747 = vmatprep.mubr.msk.bf16.mxu0 %vm3047_vm0, %v3046_v1  ;;  %2744 = vmatpush3.bf16.msra.mxu0 %v2945_v58  ;;  %v1054_v58 = vld [vmem:[%s3710_s0 + $0x30] sm:$0xff] }
 0x595   :  { %2745 = vmatprep.subr.bf16.mxu0 %v3046_v1 }
 0x598   :  { %2746 = vmatpush3.bf16.msra.mxu0 %v2946_v6 }
 0x599   :  { %2763 = vmatprep.subr.bf16.mxu0 %v3046_v1 }
 0x617   :  { %v416_v14 = vpop.f32.mrf.mxu0 }
 0x618   :  { %v417_v25 = vadd.f32 %v416_v14, %v3219_v40  ;;  %v107_v40 = vunpack.c.l.bf16 %v106_v46 }
 0x619   :  { %v2709_v15 = vpop.f32.mrf.mxu0 }
 0x61a   :  { %v732_v15 = vld [vmem:[%s3709_s1 + $0x7c] sm:$0x1] }
 0x61b   :  { %v419_v4 = vpop.f32.mrf.mxu0 }
 0x61c   :  { %v420_v26 = vadd.f32 %v419_v4, %v3221_v42  ;;  %v673_v42 = vrot.slane %v107_v40, %v3089_v8  ;;  %v733_v4 = vunpack.c.l.bf16 %v732_v15  ;;  %v2950_v40 = vld [vmem:[%s3709_s1 + $0x68] sm:$0xff]  }
 0x61d   :  { %v2710_v16 = vpop.f32.mrf.mxu0 }
 0x61e   :  { %v734_v16 = vld [vmem:[%s3709_s1 + $0x80] sm:$0x1] }
 0x61f   :  { %v537_v18 = vpop.f32.mrf.mxu0 }
 0x620   :  { %v544_v28 = vadd.f32 %v537_v18, %v417_v25 }
 0x621   :  { %v2721_v19 = vpop.f32.mrf.mxu0 }
 0x623   :  { %v540_v22 = vpop.f32.mrf.mxu0 }
 0x624   :  { %v545_v29 = vadd.f32 %v540_v22, %v420_v26  ;;  %v735_v22 = vunpack.c.l.bf16 %v734_v16 }
 0x625   :  { %v2722_v23 = vpop.f32.mrf.mxu0 }
 0x626   :  { %v766_v23 = vrot.slane %v733_v4, %v3089_v8 }
 0x653   :  { %v660_v24 = vpop.f32.mrf.mxu0 }
 0x654   :  { %v667_v34 = vadd.f32 %v660_v24, %v544_v28 }
 0x655   :  { %v2733_v27 = vpop.f32.mrf.mxu0 }
 0x656   :  { %v772_v27 = vrot.slane %v735_v22, %v3089_v8 }
 0x657   :  { %v663_v31 = vpop.f32.mrf.mxu0 }
 0x658   :  { %v668_v38 = vadd.f32 %v663_v31, %v545_v29 }
 0x659   :  { %v2734_v41 = vpop.f32.mrf.mxu0 }
 0x65a   :  { %v669_v43 = vpack.c.bf16 %v668_v38, %v667_v34  ;;  %v2947_v34 = vld [vmem:[%s3709_s1 + $0x10] sm:$0xff]   ;;  %v2948_v41 = vld [vmem:[%s3709_s1 + $0x8] sm:$0xff]  }
 0x65c   :  { %2740 = vmatmul.mubr.msk.bf16.vlgmr.msra.gmra.mxu1 %vm125_vm1, %v669_v43  ;;  %v972_v43 = vld [vmem:[%s3710_s0 + $0x18] sm:$0xff] }
 0x65d   :  { %2759 = vmatprep.mubr.msk.bf16.mxu1 %vm3047_vm0, %v3046_v1  ;;  %2752 = vmatpush3.bf16.msra.mxu1 %v2949_v7  ;;  %v973_v46 = vpack.c.bf16 %v972_v43, %v972_v43 }
 0x65e   :  { %2753 = vmatprep.subr.bf16.mxu1 %v3046_v1 }
 0x661   :  { %2754 = vmatpush3.bf16.msra.mxu1 %v2950_v40 }
 0x662   :  { %2755 = vmatprep.subr.bf16.mxu1 %v3046_v1 }
 0x71c   :  { %v723_v48 = vpop.f32.mrf.mxu1 }
 0x71d   :  { %v724_v49 = vadd.f32 %v723_v48, %v673_v42  ;;  %v2952_v48 = vld [vmem:[%s3709_s1 + $0x58] sm:$0xff]  }
 0x71e   :  { %v2741_v50 = vpop.f32.mrf.mxu1 }
 0x71f   :  { %v730_v37 = vadd.f32 %v724_v49, %v3106_v20  ;;  %v2953_v49 = vld [vmem:[%s3709_s1 + $0xa4] sm:$0xff]   ;;  %v2954_v50 = vld [vmem:[%s3709_s1 + $0x9c] sm:$0xff]  }
 0x720   :  { %v726_v53 = vpop.f32.mrf.mxu1 }
 0x721   :  { %v727_v54 = vadd.f32 %v726_v53, %v673_v42  ;;  %v736_v55 = vsel %vm125_vm1, %v730_v37, 0.0  ;;  %v2951_v42 = vld [vmem:[%s3709_s1 + $0x60] sm:$0xff]  }
 0x722   :  { %737 = vadd.xlane.f32.xlu0 %v736_v55  ;;  %v2742_v56 = vpop.f32.mrf.mxu1  ;;  %2756 = vmatpush3.bf16.msra.mxu1 %v2951_v42  ;;  %v1047_v55 = vld [vmem:[%s3709_s1 + $0x90] sm:$0x1] }
 0x723   :  { %v731_v57 = vadd.f32 %v727_v54, %v3108_v21  ;;  %v37_v21 = vld [vmem:[%s3710_s0 + $0x50] sm:$0xff]  ;;  %2757 = vmatprep.subr.bf16.mxu1 %v3046_v1 }
 0x724   :  { %v779_v54 = vld [vmem:[%s3709_s1 + $0x54] sm:$0x1] }
 0x725   :  { %v739_v59 = vsel %vm125_vm1, %v731_v57, 0.0  ;;  %v780_v56 = vunpack.c.l.bf16 %v779_v54 }
 0x726   :  { %740 = vadd.xlane.f32.xlu1 %v739_v59  ;;  %2758 = vmatpush3.bf16.msra.mxu1 %v2952_v48  ;;  %v1048_v59 = vunpack.c.l.bf16 %v1047_v55  ;;  %v2525_v55 = vld [vmem:[%s3710_s0 + $0x58] ss:$0 sm:$0xff] }
 0x727   :  { %2779 = vmatprep.subr.bf16.mxu1 %v3046_v1 }
 0x7ab   :  { %v738_v60 = vpop.xlane.xlu0 %737 }
 0x7ac   :  { %v743_v61 = vmul.f32 0.03125, %v738_v60  ;;  %v1039_v60 = vld [vmem:[%s3710_s0 + $0x10] sm:$0xff] }
 0x7ae   :  { %v745_v36 = vsub.f32 %v730_v37, %v743_v61  ;;  %v1040_v37 = vld [vmem:[%s3709_s1 + $0x8c] sm:$0x1]  ;;  %v978_v61 = vld [vmem:[%s3709_s1 + $0x18] sm:$0x1] }
 0x7af   :  { %v741_v62 = vpop.xlane.xlu1 %740  ;;  %v1041_v53 = vunpack.c.l.bf16 %v1040_v37 }
 0x7b0   :  { %v744_v63 = vmul.f32 0.03125, %v741_v62  ;;  %v747_v52 = vmul.f32 %v745_v36, %v745_v36 }
 0x7b2   :  { %v746_v0 = vsub.f32 %v731_v57, %v744_v63  ;;  %v749_v20 = vsel %vm125_vm1, %v747_v52, 0.0  ;;  %v1045_v57 = vrot.slane %v1041_v53, %v3089_v8  ;;  %v1052_v63 = vrot.slane %v1048_v59, %v3089_v8 }
 0x7b3   :  { %750 = vadd.xlane.f32.xlu0 %v749_v20 }
 0x7b4   :  { %v748_v2 = vmul.f32 %v746_v0, %v746_v0  ;;  %v1046_v62 = vmul.f32 %v1045_v57, %v1039_v60 }
 0x7b6   :  { %v752_v5 = vsel %vm125_vm1, %v748_v2, 0.0 }
 0x7b7   :  { %753 = vadd.xlane.f32.xlu0 %v752_v5  ;;  %v1053_v5 = vadd.f32 %v1052_v63, %v1046_v62 }
 0x7cd   :  { %61 = vperm.xlu0 %2939, %v37_v21  }
 0x83c   :  { %v751_v9 = vpop.xlane.xlu0 %750 }
 0x83d   :  { %v755_v10 = vmul.f32 0.03125, %v751_v9 }
 0x83f   :  { %v757_v11 = vadd.f32 1e-05, %v755_v10 }
 0x840   :  { %v754_v12 = vpop.xlane.xlu0 %753 }
 0x841   :  { %2999 = vrsqrt.f32 %v757_v11  ;;  %v756_v13 = vmul.f32 0.03125, %v754_v12  ;;  %v1055_v12 = vadd.f32 %v1054_v58, %v1053_v5 }
 0x843   :  { %v758_v14 = vadd.f32 1e-05, %v756_v13 }
 0x845   :  { %3001 = vrsqrt.f32 %v758_v14 }
 0x84e   :  { %v3000_v18 = vpop.eup %2999 }
 0x84f   :  { %v761_v19 = vmul.f32 %v3000_v18, %v745_v36  ;;  %v795_v36 = vrot.slane %v780_v56, %v3089_v8  ;;  %v3419_v56 = vpop.permute.xlu0 %61 }
 0x850   :  { %vm68_vm3 = vcmp.eq.f32.partialorder %v3419_v56, %v2525_v55 }
 0x851   :  { %v767_v26 = vmul.f32 %v766_v23, %v761_v19  ;;  %vm70_vm4 = vmand %vm68_vm3, %vm69_vm2 }
 0x852   :  { %v3002_v24 = vpop.eup %3001  ;;  %v3425_v57 = vsel %vm70_vm4, 0.0, %v3050_v51 }
 0x853   :  { %v762_v25 = vmul.f32 %v3002_v24, %v746_v0  ;;  %v3318_v29 = vadd.f32 %v772_v27, %v767_v26  ;;  %v979_v0 = vunpack.c.l.bf16 %v978_v61 }
 0x855   :  { %v768_v28 = vmul.f32 %v766_v23, %v762_v25  ;;  %v983_v7 = vrot.slane %v979_v0, %v3089_v8  ;;  %v1061_v23 = vld [vmem:[%s3709_s1 + $0xac] sm:$0x1] }
 0x856   :  { %v1062_v24 = vunpack.c.l.bf16 %v1061_v23 }
 0x857   :  { %v3320_v31 = vadd.f32 %v772_v27, %v768_v28 }
 0x858   :  { %v1073_v26 = vrot.slane %v1062_v24, %v3089_v8 }
 0x859   :  { %v791_v38 = vpack.c.bf16 %v3320_v31, %v3318_v29 }
 0x85b   :  { %2748 = vmatmul.mubr.msk.bf16.vlgmr.msra.gmra.mxu0 %vm125_vm1, %v791_v38 }
 0x85c   :  { %2764 = vmatpush3.bf16.msra.mxu0 %v2947_v34  ;;  %2767 = vmatprep.mubr.msk.bf16.mxu0 %vm3047_vm0, %v3046_v1 }
 0x85d   :  { %2765 = vmatprep.subr.bf16.mxu0 %v3046_v1 }
 0x860   :  { %2766 = vmatpush3.bf16.msra.mxu0 %v2948_v41 }
 0x861   :  { %2771 = vmatprep.subr.bf16.mxu0 %v3046_v1 }
 0x863   :  { %2768 = vmatmul.mubr.msk.bf16.vlgmr.msra.gmra.mxu0 %vm125_vm1, %v973_v46 }
 0x864   :  { %2775 = vmatprep.mubr.msk.bf16.mxu0 %vm3047_vm0, %v3046_v1  ;;  %2772 = vmatpush3.bf16.msra.mxu0 %v2953_v49 }
 0x865   :  { %2773 = vmatprep.subr.bf16.mxu0 %v3046_v1 }
 0x868   :  { %2774 = vmatpush3.bf16.msra.mxu0 %v2954_v50 }
 0x869   :  { %2785 = vmatprep.subr.bf16.mxu0 %v3046_v1 }
 0x91b   :  { %v845_v52 = vpop.f32.mrf.mxu0 }
 0x91c   :  { %v846_v2 = vadd.f32 %v845_v52, %v795_v36 }
 0x91d   :  { %v2749_v20 = vpop.f32.mrf.mxu0 }
 0x91e   :  { %v852_v10 = vmax.f32 %v846_v2, 0.0 }
 0x91f   :  { %v848_v21 = vpop.f32.mrf.mxu0 }
 0x920   :  { %v849_v6 = vadd.f32 %v848_v21, %v795_v36 }
 0x921   :  { %v2750_v9 = vpop.f32.mrf.mxu0 }
 0x922   :  { %v853_v11 = vmax.f32 %v849_v6, 0.0 }
 0x923   :  { %v1033_v13 = vpop.f32.mrf.mxu0 }
 0x924   :  { %v854_v14 = vpack.c.bf16 %v853_v11, %v852_v10  ;;  %v1034_v15 = vadd.f32 %v1033_v13, %v983_v7 }
 0x925   :  { %v2769_v4 = vpop.f32.mrf.mxu0 }
 0x926   :  { %v3383_v16 = vadd.f32 %v1055_v12, %v1034_v15  ;;  %2760 = vmatmul.mubr.msk.bf16.vlgmr.msra.gmra.mxu1 %vm883_vm15, %v854_v14 }
 0x927   :  { %v1036_v18 = vpop.f32.mrf.mxu0  ;;  %2781 = vmatprep.mubr.msk.bf16.mxu1 %vm3047_vm0, %v3046_v1 }
 0x928   :  { %v1069_v19 = vpack.c.bf16 %v3383_v16, %v3383_v16 }
 0x929   :  { %v2770_v22 = vpop.f32.mrf.mxu0 }
 0x92a   :  { %2776 = vmatmul.mubr.msk.bf16.vlgmr.msra.gmra.mxu0 %vm125_vm1, %v1069_v19 }
 0x92b   :  { %2787 = vmatprep.mubr.msk.bf16.mxu0 %vm3047_vm0, %v3046_v1 }
 0x9e6   :  { %v3396_v25 = vpop.f32.mrf.mxu1 }
 0x9e8   :  { %v2761_v27 = vpop.f32.mrf.mxu1 }
 0x9ea   :  { %v3399_v28 = vpop.f32.mrf.mxu1  ;;  %v1123_v34 = vpop.f32.mrf.mxu0 }
 0x9eb   :  { %v1124_v38 = vadd.f32 %v1123_v34, %v1073_v26 }
 0x9ec   :  { %v2762_v41 = vpop.f32.mrf.mxu1  ;;  %v2777_v43 = vpop.f32.mrf.mxu0 }
 0x9ed   :  { %v3401_v46 = vpack.c.bf16 %v1124_v38, %v1124_v38  ;;  %v1129_v48 = vmul.f32 0.35355338, %v1124_v38 }
 0x9ee   :  { %v1126_v40 = vpop.f32.mrf.mxu0 }
 0x9ef   :  { %1134 = vrot.lane.b32.xlu1 %v3401_v46, %s3049_s29  ;;  %v1130_v37 = vpack.c.bf16 %v1129_v48, %v1129_v48  ;;  %v1252_v39 = vmul.bf16 %v3401_v46, %v3181_v17 }
 0x9f0   :  { %v2778_v42 = vpop.f32.mrf.mxu0 }
 0x9f1   :  { %v1132_v53 = vmul.bf16 %v1130_v37, %v3143_v44  ;;  %v1196_v54 = vmul.bf16 %v1130_v37, %v3145_v45  ;;  %v1352_v4 = vmul.bf16 %v1130_v37, %v3202_v32  ;;  %v1459_v18 = vmul.bf16 %v1130_v37, %v3211_v35 }
 0xa61   :  { %v1135_v49 = vpop.permute.xlu1 %1134 }
 0xa62   :  { %v1140_v50 = vsel %vm125_vm1, %v1135_v49, 0 }
 0xa63   :  { %2780 = vmatpush3.bf16.xpose.msra.mxu1 %v1140_v50  ;;  %2786 = vmatpush3.bf16.xpose.msra.mxu0 %v1140_v50 }
 0xa64   :  { %2791 = vmatprep.subr.bf16.mxu1 %v3046_v1  ;;  %2797 = vmatprep.subr.bf16.mxu0 %v3046_v1 }
 0xa6a   :  { %2782 = vmatmul.mubr.msk.bf16.vlgmr.msra.gmra.mxu1 %vm125_vm1, %v1132_v53  ;;  %2788 = vmatmul.mubr.msk.bf16.vlgmr.msra.gmra.mxu0 %vm125_vm1, %v1196_v54 }
 0xa6b   :  { %2793 = vmatprep.mubr.msk.bf16.mxu1 %vm3047_vm0, %v3046_v1  ;;  %2799 = vmatprep.mubr.msk.bf16.mxu0 %vm3047_vm0, %v3046_v1 }
 0xb2a   :  { %v1176_v59 = vpop.f32.mrf.mxu1  ;;  %v1234_v60 = vpop.f32.mrf.mxu0 }
 0xb2b   :  { %v1235_v61 = vadd.f32 %v1234_v60, %v3425_v57  ;;  %v1177_v9 = vadd.f32 %v1176_v59, %v3425_v57 }
 0xb2c   :  { %v2783_v36 = vpop.f32.mrf.mxu1  ;;  %v2789_v62 = vpop.f32.mrf.mxu0 }
 0xb2d   :  { %v1240_v63 = vsel %vm1182_vm5, %v1235_v61, -inf  ;;  %v1183_v11 = vsel %vm1182_vm5, %v1177_v9, -inf  ;;  %v1408_v36 = vmul.bf16 %v3401_v46, %v3244_v30 }
 0xb2e   :  { %v1179_v52 = vpop.f32.mrf.mxu1  ;;  %1241 = vmax.xlane.f32.xlu1 %v1240_v63  ;;  %v1237_v0 = vpop.f32.mrf.mxu0 }
 0xb2f   :  { %v789_v52 = vld [vmem:[%s3709_s1 + $0x78] sm:$0x1] }
 0xb30   :  { %v2784_v20 = vpop.f32.mrf.mxu1  ;;  %v2790_v3 = vpop.f32.mrf.mxu0 }
 0xb31   :  { %v790_v20 = vunpack.c.l.bf16 %v789_v52 }
 0xb3f   :  { %1254 = vrot.lane.b32.xlu1 %v1252_v39, %s3051_s6 }
 0xbb7   :  { %v1242_v2 = vpop.xlane.xlu1 %1241 }
 0xbb8   :  { %v1243_v5 = vsub.f32 %v1235_v61, %v1242_v2  ;;  %v1195_v61 = vmul.bf16 %v3401_v46, %v3249_v33 }
 0xbba   :  { %v1244_v21 = vmul.f32 1.442695, %v1243_v5  ;;  %v858_v5 = vrot.slane %v790_v20, %v3089_v8 }
 0xbbb   :  { %v1255_v58 = vpop.permute.xlu1 %1254 }
 0xbbc   :  { %3003 = vpow2.f32 %v1244_v21  ;;  %v1261_v6 = vsel %vm1259_vm6, %v1255_v58, 0  ;;  %v925_v21 = vadd.f32 %v3399_v28, %v858_v5 }
 0xbbd   :  { %2792 = vmatpush3.bf16.msra.mxu1 %v1261_v6 }
 0xbbe   :  { %2803 = vmatprep.subr.bf16.mxu1 %v3046_v1 }
 0xbc9   :  { %v3004_v7 = vpop.eup %3003 }
 0xbca   :  { %v1246_v10 = vsel %vm1182_vm5, %v3004_v7, 0.0 }
 0xbcb   :  { %1247 = vadd.xlane.f32.xlu0 %v1246_v10  ;;  %v3471_v10 = vadd.f32 %v925_v21, %v3320_v31  ;;  %v1515_v31 = vmul.bf16 %v3401_v46, %v3255_v47 }
 0xbcf   :  { %1184 = vmax.xlane.f32.xlu0 %v1183_v11  ;;  %v937_v11 = vsel %vm125_vm1, %v3471_v10, 0.0 }
 0xc54   :  { %v1248_v12 = vpop.xlane.xlu0 %1247 }
 0xc55   :  { %3005 = vrcp.f32 %v1248_v12 }
 0xc58   :  { %v1185_v19 = vpop.xlane.xlu0 %1184 }
 0xc59   :  { %v1186_v22 = vsub.f32 %v1177_v9, %v1185_v19  ;;  %v922_v19 = vadd.f32 %v3396_v25, %v858_v5 }
 0xc5b   :  { %v1187_v26 = vmul.f32 1.442695, %v1186_v22  ;;  %v928_v22 = vadd.f32 %v922_v19, %v3318_v29 }
 0xc5d   :  { %3007 = vpow2.f32 %v1187_v26 }
 0xc62   :  { %v3006_v13 = vpop.eup %3005 }
 0xc63   :  { %v1250_v14 = vmul.f32 %v3006_v13, %v3004_v7 }
 0xc65   :  { %v1251_v15 = vpack.c.bf16 %v1250_v14, %v1250_v14 }
 0xc67   :  { %2794 = vmatmul.mubr.msk.bf16.vlgmr.msra.gmra.mxu1 %vm1182_vm5, %v1251_v15 }
 0xc68   :  { %2804 = vmatpush3.bf16.xpose.msra.mxu1 %v1140_v50  ;;  %2805 = vmatprep.mubr.msk.bf16.mxu1 %vm3047_vm0, %v3046_v1 }
 0xc69   :  { %2815 = vmatprep.subr.bf16.mxu1 %v3046_v1 }
 0xc6a   :  { %v3008_v54 = vpop.eup %3007 }
 0xc6b   :  { %v1189_v60 = vsel %vm1182_vm5, %v3008_v54, 0.0 }
 0xc6f   :  { %2806 = vmatmul.mubr.msk.bf16.vlgmr.msra.gmra.mxu1 %vm125_vm1, %v1352_v4 }
 0xc70   :  { %2816 = vmatpush3.bf16.xpose.msra.mxu1 %v1140_v50  ;;  %2817 = vmatprep.mubr.msk.bf16.mxu1 %vm3047_vm0, %v3046_v1 }
 0xc71   :  { %2827 = vmatprep.subr.bf16.mxu1 %v3046_v1 }
 0xc77   :  { %2818 = vmatmul.mubr.msk.bf16.vlgmr.msra.gmra.mxu1 %vm125_vm1, %v1459_v18 }
 0xc78   :  { %2831 = vmatprep.mubr.msk.bf16.mxu1 %vm3047_vm0, %v3046_v1 }
 0xd27   :  { %v3450_v23 = vpop.f32.mrf.mxu1 }
 0xd29   :  { %v2795_v24 = vpop.f32.mrf.mxu1 }
 0xd2a   :  { %v934_v24 = vsel %vm125_vm1, %v928_v22, 0.0 }
 0xd2b   :  { %v1300_v27 = vpop.f32.mrf.mxu1 }
 0xd2d   :  { %v2796_v34 = vpop.f32.mrf.mxu1 }
 0xd2f   :  { %v1390_v38 = vpop.f32.mrf.mxu1 }
 0xd30   :  { %v1391_v41 = vadd.f32 %v1390_v38, %v3425_v57 }
 0xd31   :  { %v2807_v43 = vpop.f32.mrf.mxu1 }
 0xd32   :  { %v1396_v40 = vsel %vm1182_vm5, %v1391_v41, -inf }
 0xd33   :  { %1397 = vmax.xlane.f32.xlu0 %v1396_v40  ;;  %v1393_v42 = vpop.f32.mrf.mxu1 }
 0xd35   :  { %v2808_v48 = vpop.f32.mrf.mxu1 }
 0xd37   :  { %v1497_v49 = vpop.f32.mrf.mxu1 }
 0xd38   :  { %v1498_v50 = vadd.f32 %v1497_v49, %v3425_v57 }
 0xd39   :  { %v2819_v37 = vpop.f32.mrf.mxu1 }
 0xd3a   :  { %v1503_v53 = vsel %vm1182_vm5, %v1498_v50, -inf  ;;  %v2955_v37 = vld [vmem:[%s3709_s1 + $0xb8] sm:$0xff]  }
 0xd3b   :  { %1504 = vmax.xlane.f32.xlu0 %v1503_v53  ;;  %v1500_v55 = vpop.f32.mrf.mxu1  ;;  %2828 = vmatpush3.bf16.msra.mxu1 %v2955_v37  ;;  %v2956_v53 = vld [vmem:[%s3709_s1 + $0xb0] sm:$0xff]  }
 0xd3c   :  { %2829 = vmatprep.subr.bf16.mxu1 %v3046_v1 }
 0xd3d   :  { %v2820_v59 = vpop.f32.mrf.mxu1 }
 0xd3f   :  { %1190 = vadd.xlane.f32.xlu0 %v1189_v60  ;;  %2830 = vmatpush3.bf16.msra.mxu1 %v2956_v53 }
 0xd40   :  { %2843 = vmatprep.subr.bf16.mxu1 %v3046_v1 }
 0xd55   :  { %1304 = vrot.lane.b32.xlu0 %v1195_v61, %s3051_s6 }
 0xd59   :  { %1410 = vrot.lane.b32.xlu0 %v1408_v36, %s3051_s6 }
 0xdbc   :  { %v1398_v57 = vpop.xlane.xlu0 %1397 }
 0xdbd   :  { %v1399_v62 = vsub.f32 %v1391_v41, %v1398_v57 }
 0xdbf   :  { %v1400_v63 = vmul.f32 1.442695, %v1399_v62 }
 0xdc1   :  { %3009 = vpow2.f32 %v1400_v63 }
 0xdc4   :  { %v1505_v0 = vpop.xlane.xlu0 %1504 }
 0xdc5   :  { %v1506_v3 = vsub.f32 %v1498_v50, %v1505_v0 }
 0xdc7   :  { %v1507_v39 = vmul.f32 1.442695, %v1506_v3  ;;  %v1067_v3 = vld [vmem:[%s3709_s1 + $0xc0] sm:$0x1] }
 0xdc8   :  { %v1191_v2 = vpop.xlane.xlu0 %1190 }
 0xdc9   :  { %3011 = vpow2.f32 %v1507_v39  ;;  %v1068_v39 = vunpack.c.l.bf16 %v1067_v3  ;;  %v1629_v3 = vld [vmem:[%s3709_s1 + $0x128] sm:$0x1] }
 0xdca   :  { %3013 = vrcp.f32 %v1191_v2 }
 0xdcb   :  { %v1570_v5 = vrot.slane %v1068_v39, %v3089_v8 }
 0xdcc   :  { %v1305_v58 = vpop.permute.xlu0 %1304 }
 0xdcd   :  { %v1310_v6 = vsel %vm1259_vm6, %v1305_v58, 0 }
 0xdce   :  { %v3010_v7 = vpop.eup %3009  ;;  %2798 = vmatpush3.bf16.msra.mxu0 %v1310_v6 }
 0xdcf   :  { %v1402_v9 = vsel %vm1182_vm5, %v3010_v7, 0.0  ;;  %2809 = vmatprep.subr.bf16.mxu0 %v3046_v1 }
 0xdd0   :  { %1403 = vadd.xlane.f32.xlu1 %v1402_v9  ;;  %v1411_v15 = vpop.permute.xlu0 %1410 }
 0xdd1   :  { %v1416_v18 = vsel %vm1259_vm6, %v1411_v15, 0 }
 0xdd4   :  { %938 = vadd.xlane.f32.xlu1 %v937_v11 }
 0xdd6   :  { %v3012_v12 = vpop.eup %3011 }
 0xdd7   :  { %v3014_v13 = vpop.eup %3013  ;;  %v1509_v28 = vsel %vm1182_vm5, %v3012_v12, 0.0 }
 0xdd8   :  { %1510 = vadd.xlane.f32.xlu0 %v1509_v28  ;;  %v1193_v14 = vmul.f32 %v3014_v13, %v3008_v54 }
 0xdda   :  { %v1194_v4 = vpack.c.bf16 %v1193_v14, %v1193_v14 }
 0xddc   :  { %2800 = vmatmul.mubr.msk.bf16.vlgmr.msra.gmra.mxu0 %vm1182_vm5, %v1194_v4 }
 0xddd   :  { %2810 = vmatpush3.bf16.msra.mxu0 %v1416_v18  ;;  %2811 = vmatprep.mubr.msk.bf16.mxu0 %vm3047_vm0, %v3046_v1 }
 0xdde   :  { %2821 = vmatprep.subr.bf16.mxu0 %v3046_v1 }
 0xdee   :  { %1517 = vrot.lane.b32.xlu0 %v1515_v31, %s3051_s6 }
 0xe0d   :  { %935 = vadd.xlane.f32.xlu0 %v934_v24 }
 0xe59   :  { %v1404_v26 = vpop.xlane.xlu1 %1403 }
 0xe5a   :  { %3015 = vrcp.f32 %v1404_v26 }
 0xe5d   :  { %v939_v21 = vpop.xlane.xlu1 %938 }
 0xe5e   :  { %v941_v6 = vmul.f32 0.03125, %v939_v21 }
 0xe60   :  { %v943_v28 = vsub.f32 %v3471_v10, %v941_v6 }
 0xe61   :  { %v1511_v27 = vpop.xlane.xlu0 %1510 }
 0xe62   :  { %3017 = vrcp.f32 %v1511_v27  ;;  %v945_v31 = vmul.f32 %v943_v28, %v943_v28 }
 0xe64   :  { %v949_v19 = vsel %vm125_vm1, %v945_v31, 0.0 }
 0xe65   :  { %v1518_v41 = vpop.permute.xlu0 %1517 }
 0xe66   :  { %v1523_v40 = vsel %vm1259_vm6, %v1518_v41, 0 }
 0xe67   :  { %v3016_v34 = vpop.eup %3015 }
 0xe68   :  { %v1406_v38 = vmul.f32 %v3016_v34, %v3010_v7 }
 0xe6a   :  { %v1407_v43 = vpack.c.bf16 %v1406_v38, %v1406_v38 }
 0xe6c   :  { %2812 = vmatmul.mubr.msk.bf16.vlgmr.msra.gmra.mxu0 %vm1182_vm5, %v1407_v43 }
 0xe6d   :  { %2822 = vmatpush3.bf16.msra.mxu0 %v1523_v40  ;;  %2823 = vmatprep.mubr.msk.bf16.mxu0 %vm3047_vm0, %v3046_v1 }
 0xe6e   :  { %2835 = vmatprep.subr.bf16.mxu0 %v3046_v1 }
 0xe6f   :  { %v3018_v29 = vpop.eup %3017 }
 0xe70   :  { %v1513_v25 = vmul.f32 %v3018_v29, %v3012_v12 }
 0xe72   :  { %v1514_v46 = vpack.c.bf16 %v1513_v25, %v1513_v25 }
 0xe74   :  { %2824 = vmatmul.mubr.msk.bf16.vlgmr.msra.gmra.mxu0 %vm1182_vm5, %v1514_v46  ;;  %v930_v46 = vld [vmem:[%s3709_s1 + $0x84] sm:$0x1] }
 0xe75   :  { %2839 = vmatprep.mubr.msk.bf16.mxu0 %vm3047_vm0, %v3046_v1 }
 0xe96   :  { %v936_v2 = vpop.xlane.xlu0 %935 }
 0xe9c   :  { %v1346_v42 = vpop.f32.mrf.mxu0 }
 0xe9d   :  { %v1347_v60 = vadd.f32 %v1346_v42, %v3450_v23  ;;  %v940_v23 = vmul.f32 0.03125, %v936_v2  ;;  %v931_v42 = vunpack.c.l.bf16 %v930_v46  ;;  %v1630_v2 = vunpack.c.l.bf16 %v1629_v3 }
 0xe9e   :  { %v2801_v48 = vpop.f32.mrf.mxu0 }
 0xe9f   :  { %v942_v7 = vsub.f32 %v928_v22, %v940_v23  ;;  %v2957_v22 = vld [vmem:[%s3709_s1 + $0xcc] sm:$0xff]   ;;  %v932_v48 = vld [vmem:[%s3709_s1 + $0x88] sm:$0x1]  ;;  %v963_v53 = vrot.slane %v931_v42, %v3089_v8 }
 0xea0   :  { %v1349_v49 = vpop.f32.mrf.mxu0  ;;  %2836 = vmatpush3.bf16.msra.mxu0 %v2957_v22  ;;  %v933_v37 = vunpack.c.l.bf16 %v932_v48 }
 0xea1   :  { %v944_v15 = vmul.f32 %v942_v7, %v942_v7  ;;  %2837 = vmatprep.subr.bf16.mxu0 %v3046_v1 }
 0xea2   :  { %v2802_v50 = vpop.f32.mrf.mxu0 }
 0xea3   :  { %v946_v18 = vsel %vm125_vm1, %v944_v15, 0.0 }
 0xf2c   :  { %v1452_v54 = vpop.f32.mrf.mxu0 }
 0xf2d   :  { %v1458_v36 = vadd.f32 %v1452_v54, %v1347_v60  ;;  %v969_v60 = vrot.slane %v933_v37, %v3089_v8 }
 0xf2e   :  { %v2813_v55 = vpop.f32.mrf.mxu0 }
 0xf30   :  { %v1455_v59 = vpop.f32.mrf.mxu0 }
 0xf32   :  { %v2814_v61 = vpop.f32.mrf.mxu0 }
 0xf34   :  { %v1559_v57 = vpop.f32.mrf.mxu0 }
 0xf35   :  { %v1565_v62 = vadd.f32 %v1559_v57, %v1458_v36 }
 0xf36   :  { %v2825_v63 = vpop.f32.mrf.mxu0 }
 0xf37   :  { %v1566_v52 = vpack.c.bf16 %v1565_v62, %v1565_v62 }
 0xf38   :  { %v1562_v0 = vpop.f32.mrf.mxu0 }
 0xf39   :  { %2832 = vmatmul.mubr.msk.bf16.vlgmr.msra.gmra.mxu1 %vm125_vm1, %v1566_v52 }
 0xf3a   :  { %v2826_v20 = vpop.f32.mrf.mxu0  ;;  %2847 = vmatprep.mubr.msk.bf16.mxu1 %vm3047_vm0, %v3046_v1  ;;  %2844 = vmatpush3.bf16.msra.mxu1 %v2957_v22 }
 0xf3b   :  { %2845 = vmatprep.subr.bf16.mxu1 %v3046_v1  ;;  %v1627_v20 = vld [vmem:[%s3709_s1 + $0x124] sm:$0x1] }
 0xf3c   :  { %v1628_v39 = vunpack.c.l.bf16 %v1627_v20 }
 0xf3e   :  { %v1647_v23 = vrot.slane %v1628_v39, %v3089_v8 }
 0xff9   :  { %v1620_v58 = vpop.f32.mrf.mxu1 }
 0xffa   :  { %v1621_v9 = vadd.f32 %v1620_v58, %v1570_v5  ;;  %v1652_v58 = vrot.slane %v1630_v2, %v3089_v8 }
 0xffb   :  { %v2833_v11 = vpop.f32.mrf.mxu1 }
 0xffc   :  { %v1626_v12 = vadd.f32 %v1621_v9, %v3383_v16  ;;  %v2958_v16 = vld [vmem:[%s3709_s1 + $0xc4] sm:$0xff]   ;;  %v1658_v11 = vld [vmem:[%s3709_s1 + $0xd4] sm:$0x1] }
 0xffd   :  { %v1623_v13 = vpop.f32.mrf.mxu1  ;;  %2846 = vmatpush3.bf16.msra.mxu1 %v2958_v16  ;;  %2838 = vmatpush3.bf16.msra.mxu0 %v2958_v16 }
 0xffe   :  { %v1631_v14 = vsel %vm125_vm1, %v1626_v12, 0.0  ;;  %2851 = vmatprep.subr.bf16.mxu0 %v3046_v1  ;;  %2857 = vmatprep.subr.bf16.mxu1 %v3046_v1 }
 0xfff   :  { %1632 = vadd.xlane.f32.xlu1 %v1631_v14  ;;  %v2834_v4 = vpop.f32.mrf.mxu1 }
0x1003   :  { %947 = vadd.xlane.f32.xlu1 %v946_v18 }
0x1007   :  { %950 = vadd.xlane.f32.xlu1 %v949_v19 }
0x1088   :  { %v1633_v10 = vpop.xlane.xlu1 %1632 }
0x1089   :  { %v1634_v24 = vmul.f32 0.03125, %v1633_v10 }
0x108b   :  { %v1635_v26 = vsub.f32 %v1626_v12, %v1634_v24  ;;  %v1659_v12 = vunpack.c.l.bf16 %v1658_v11 }
0x108c   :  { %v948_v27 = vpop.xlane.xlu1 %947 }
0x108d   :  { %v952_v34 = vmul.f32 0.03125, %v948_v27  ;;  %v1636_v38 = vmul.f32 %v1635_v26, %v1635_v26 }
0x108f   :  { %v954_v41 = vadd.f32 1e-05, %v952_v34  ;;  %v1637_v43 = vsel %vm125_vm1, %v1636_v38, 0.0 }
0x1090   :  { %1638 = vadd.xlane.f32.xlu1 %v1637_v43  ;;  %v951_v40 = vpop.xlane.xlu1 %950 }
0x1091   :  { %3019 = vrsqrt.f32 %v954_v41  ;;  %v953_v29 = vmul.f32 0.03125, %v951_v40 }
0x1093   :  { %v955_v25 = vadd.f32 1e-05, %v953_v29 }
0x1095   :  { %3021 = vrsqrt.f32 %v955_v25 }
0x109e   :  { %v3020_v49 = vpop.eup %3019 }
0x109f   :  { %v958_v50 = vmul.f32 %v3020_v49, %v942_v7 }
0x10a1   :  { %v964_v59 = vmul.f32 %v963_v53, %v958_v50 }
0x10a2   :  { %v3022_v54 = vpop.eup %3021 }
0x10a3   :  { %v959_v55 = vmul.f32 %v3022_v54, %v943_v28  ;;  %v970_v36 = vadd.f32 %v969_v60, %v964_v59  ;;  %v1670_v28 = vrot.slane %v1659_v12, %v3089_v8 }
0x10a5   :  { %v965_v61 = vmul.f32 %v963_v53, %v959_v55 }
0x10a7   :  { %v971_v57 = vadd.f32 %v969_v60, %v965_v61 }
0x10a9   :  { %v1726_v62 = vpack.c.bf16 %v971_v57, %v970_v36 }
0x10ab   :  { %2848 = vmatmul.mubr.msk.bf16.vlgmr.msra.gmra.mxu1 %vm125_vm1, %v1726_v62 }
0x10ac   :  { %2859 = vmatprep.mubr.msk.bf16.mxu1 %vm3047_vm0, %v3046_v1 }
0x1119   :  { %v1639_v63 = vpop.xlane.xlu1 %1638 }
0x111a   :  { %v1640_v52 = vmul.f32 0.03125, %v1639_v63 }
0x111c   :  { %v1641_v0 = vadd.f32 1e-05, %v1640_v52 }
0x111e   :  { %3023 = vrsqrt.f32 %v1641_v0 }
0x112b   :  { %v3024_v5 = vpop.eup %3023 }
0x112c   :  { %v1643_v21 = vmul.f32 %v3024_v5, %v1635_v26 }
0x112e   :  { %v1648_v6 = vmul.f32 %v1647_v23, %v1643_v21 }
0x1130   :  { %v3547_v7 = vadd.f32 %v1652_v58, %v1648_v6 }
0x1132   :  { %v1666_v9 = vpack.c.bf16 %v3547_v7, %v3547_v7 }
0x1134   :  { %2840 = vmatmul.mubr.msk.bf16.vlgmr.msra.gmra.mxu0 %vm125_vm1, %v1666_v9 }
0x1135   :  { %2853 = vmatprep.mubr.msk.bf16.mxu0 %vm3047_vm0, %v3046_v1 }
0x116b   :  { %v1764_v13 = vpop.f32.mrf.mxu1 }
0x116c   :  { %v1765_v4 = vadd.f32 %v1764_v13, %v1670_v28 }
0x116d   :  { %v2849_v14 = vpop.f32.mrf.mxu1 }
0x116f   :  { %v1767_v15 = vpop.f32.mrf.mxu1 }
0x1170   :  { %v1768_v18 = vadd.f32 %v1767_v15, %v1670_v28 }
0x1171   :  { %v2850_v31 = vpop.f32.mrf.mxu1 }
0x1172   :  { %v3558_v19 = vpack.c.bf16 %v1768_v18, %v1765_v4 }
0x1174   :  { %1776 = vrot.lane.b32.xlu1 %v3558_v19, %s3049_s29  ;;  %v1893_v22 = vmul.bf16 %v3558_v19, %v3181_v17 }
0x1178   :  { %1895 = vrot.lane.b32.xlu1 %v1893_v22, %s3051_s6 }
0x11e6   :  { %v1777_v16 = vpop.permute.xlu1 %1776 }
0x11e7   :  { %v1782_v10 = vsel %vm125_vm1, %v1777_v16, 0 }
0x11e8   :  { %2852 = vmatpush3.bf16.xpose.msra.mxu0 %v1782_v10  ;;  %2858 = vmatpush3.bf16.xpose.msra.mxu1 %v1782_v10 }
0x11e9   :  { %2863 = vmatprep.subr.bf16.mxu0 %v3046_v1  ;;  %2869 = vmatprep.subr.bf16.mxu1 %v3046_v1 }
0x11ea   :  { %v1896_v29 = vpop.permute.xlu1 %1895 }
0x11f4   :  { %v1720_v24 = vpop.f32.mrf.mxu0 }
0x11f5   :  { %v1721_v26 = vadd.f32 %v1720_v24, %v1670_v28  ;;  %v1836_v24 = vmul.bf16 %v3558_v19, %v3249_v33 }
0x11f6   :  { %v2841_v27 = vpop.f32.mrf.mxu0 }
0x11f7   :  { %v1771_v34 = vmul.f32 0.35355338, %v1721_v26 }
0x11f8   :  { %v1723_v38 = vpop.f32.mrf.mxu0 }
0x11f9   :  { %v1772_v41 = vpack.c.bf16 %v1771_v34, %v1771_v34 }
0x11fa   :  { %v2842_v43 = vpop.f32.mrf.mxu0 }
0x11fb   :  { %v1774_v17 = vmul.bf16 %v1772_v41, %v3143_v44  ;;  %v1837_v40 = vmul.bf16 %v1772_v41, %v3145_v45  ;;  %v3045_v44 = vld [vmem:[%s3710_s0 + $0x48] ss:$0 sm:$0xff]  ;;  %v1988_v20 = vmul.bf16 %v1772_v41, %v3202_v32  ;;  %v2093_v3 = vmul.bf16 %v1772_v41, %v3211_v35 }
0x11fc   :  { %vm72_vm7 = vcmp.eq.f32.partialorder %v3419_v56, %v3045_v44 }
0x11fd   :  { %2854 = vmatmul.mubr.msk.bf16.vlgmr.msra.gmra.mxu0 %vm125_vm1, %v1774_v17  ;;  %2860 = vmatmul.mubr.msk.bf16.vlgmr.msra.gmra.mxu1 %vm125_vm1, %v1837_v40  ;;  %v73_v45 = vsel %vm72_vm7, 0.0, %v3050_v51 }
0x11fe   :  { %2864 = vmatpush3.bf16.msra.mxu0 %v1896_v29  ;;  %2865 = vmatprep.mubr.msk.bf16.mxu0 %vm3047_vm0, %v3046_v1 }
0x11ff   :  { %2875 = vmatprep.subr.bf16.mxu0 %v3046_v1  ;;  %2871 = vmatprep.mubr.msk.bf16.mxu1 %vm3047_vm0, %v3046_v1 }
0x12bd   :  { %v1818_v25 = vpop.f32.mrf.mxu0  ;;  %v1875_v46 = vpop.f32.mrf.mxu1 }
0x12be   :  { %v1876_v42 = vadd.f32 %v1875_v46, %v73_v45  ;;  %v1819_v56 = vadd.f32 %v1818_v25, %v73_v45 }
0x12bf   :  { %v2855_v48 = vpop.f32.mrf.mxu0  ;;  %v2861_v49 = vpop.f32.mrf.mxu1 }
0x12c0   :  { %v1881_v50 = vsel %vm225_vm8, %v1876_v42, -inf  ;;  %v1824_v57 = vsel %vm225_vm8, %v1819_v56, -inf  ;;  %v2149_v48 = vmul.bf16 %v3558_v19, %v3255_v47 }
0x12c1   :  { %1882 = vmax.xlane.f32.xlu0 %v1881_v50  ;;  %v1821_v37 = vpop.f32.mrf.mxu0  ;;  %v1878_v53 = vpop.f32.mrf.mxu1 }
0x12c3   :  { %v2856_v54 = vpop.f32.mrf.mxu0  ;;  %v2862_v55 = vpop.f32.mrf.mxu1 }
0x134a   :  { %v1883_v59 = vpop.xlane.xlu0 %1882 }
0x134b   :  { %v1884_v60 = vsub.f32 %v1876_v42, %v1883_v59 }
0x134d   :  { %v1885_v61 = vmul.f32 1.442695, %v1884_v60 }
0x134f   :  { %3025 = vpow2.f32 %v1885_v61 }
0x135c   :  { %v3026_v36 = vpop.eup %3025 }
0x135d   :  { %v1887_v51 = vsel %vm225_vm8, %v3026_v36, 0.0 }
0x135e   :  { %1888 = vadd.xlane.f32.xlu0 %v1887_v51  ;;  %v2959_v51 = vld [vmem:[%s3709_s1 + $0xe0] sm:$0xff]  }
0x1362   :  { %1825 = vmax.xlane.f32.xlu0 %v1824_v57  ;;  %v2960_v57 = vld [vmem:[%s3709_s1 + $0xd8] sm:$0xff]  }
0x13e7   :  { %v1889_v62 = vpop.xlane.xlu0 %1888 }
0x13e8   :  { %3027 = vrcp.f32 %v1889_v62 }
0x13eb   :  { %v1826_v39 = vpop.xlane.xlu0 %1825 }
0x13ec   :  { %v1827_v2 = vsub.f32 %v1819_v56, %v1826_v39 }
0x13ee   :  { %v1828_v5 = vmul.f32 1.442695, %v1827_v2 }
0x13f0   :  { %3029 = vpow2.f32 %v1828_v5 }
0x13f5   :  { %v3028_v63 = vpop.eup %3027 }
0x13f6   :  { %v1891_v52 = vmul.f32 %v3028_v63, %v3026_v36 }
0x13f8   :  { %v1892_v0 = vpack.c.bf16 %v1891_v52, %v1891_v52 }
0x13fa   :  { %2866 = vmatmul.mubr.msk.bf16.vlgmr.msra.gmra.mxu0 %vm225_vm8, %v1892_v0 }
0x13fb   :  { %2876 = vmatpush3.bf16.xpose.msra.mxu0 %v1782_v10  ;;  %2877 = vmatprep.mubr.msk.bf16.mxu0 %vm3047_vm0, %v3046_v1 }
0x13fc   :  { %2887 = vmatprep.subr.bf16.mxu0 %v3046_v1 }
0x13fd   :  { %v3030_v18 = vpop.eup %3029 }
0x13fe   :  { %v1830_v16 = vsel %vm225_vm8, %v3030_v18, 0.0 }
0x1402   :  { %2878 = vmatmul.mubr.msk.bf16.vlgmr.msra.gmra.mxu0 %vm125_vm1, %v1988_v20 }
0x1403   :  { %2888 = vmatpush3.bf16.xpose.msra.mxu0 %v1782_v10  ;;  %2889 = vmatprep.mubr.msk.bf16.mxu0 %vm3047_vm0, %v3046_v1  ;;  %v2044_v10 = vmul.bf16 %v3558_v19, %v3244_v30 }
0x1404   :  { %2899 = vmatprep.subr.bf16.mxu0 %v3046_v1 }
0x140a   :  { %2890 = vmatmul.mubr.msk.bf16.vlgmr.msra.gmra.mxu0 %vm125_vm1, %v2093_v3 }
0x140b   :  { %2903 = vmatprep.mubr.msk.bf16.mxu0 %vm3047_vm0, %v3046_v1  ;;  %2900 = vmatpush3.bf16.msra.mxu0 %v2959_v51 }
0x140c   :  { %2901 = vmatprep.subr.bf16.mxu0 %v3046_v1 }
0x140f   :  { %2902 = vmatpush3.bf16.msra.mxu0 %v2960_v57 }
0x1410   :  { %2915 = vmatprep.subr.bf16.mxu0 %v3046_v1 }
0x14ba   :  { %v3598_v23 = vpop.f32.mrf.mxu0 }
0x14bc   :  { %v2867_v32 = vpop.f32.mrf.mxu0 }
0x14be   :  { %v1938_v21 = vpop.f32.mrf.mxu0 }
0x14c0   :  { %v2868_v58 = vpop.f32.mrf.mxu0 }
0x14c2   :  { %v2026_v6 = vpop.f32.mrf.mxu0 }
0x14c3   :  { %v2027_v9 = vadd.f32 %v2026_v6, %v73_v45  ;;  %v1664_v6 = vld [vmem:[%s3709_s1 + $0xe8] sm:$0x1] }
0x14c4   :  { %v2879_v11 = vpop.f32.mrf.mxu0 }
0x14c5   :  { %v2032_v12 = vsel %vm225_vm8, %v2027_v9, -inf }
0x14c6   :  { %2033 = vmax.xlane.f32.xlu1 %v2032_v12  ;;  %v2029_v35 = vpop.f32.mrf.mxu0 }
0x14c8   :  { %v2880_v13 = vpop.f32.mrf.mxu0 }
0x14ca   :  { %v2131_v28 = vpop.f32.mrf.mxu0 }
0x14cb   :  { %v2132_v14 = vadd.f32 %v2131_v28, %v73_v45 }
0x14cc   :  { %v2891_v15 = vpop.f32.mrf.mxu0 }
0x14cd   :  { %v2137_v4 = vsel %vm225_vm8, %v2132_v14, -inf }
0x14ce   :  { %2138 = vmax.xlane.f32.xlu0 %v2137_v4  ;;  %v2134_v31 = vpop.f32.mrf.mxu0 }
0x14d0   :  { %v2892_v22 = vpop.f32.mrf.mxu0 }
0x14d2   :  { %1831 = vadd.xlane.f32.xlu0 %v1830_v16 }
0x14d7   :  { %2046 = vrot.lane.b32.xlu1 %v2044_v10, %s3051_s6  ;;  %v2961_v10 = vld [vmem:[%s3709_s1 + $0xf4] sm:$0xff]  }
0x14e8   :  { %1942 = vrot.lane.b32.xlu0 %v1836_v24, %s3051_s6  ;;  %v2963_v24 = vld [vmem:[%s3709_s1 + $0x118] sm:$0xff]  }
0x154f   :  { %v2034_v26 = vpop.xlane.xlu1 %2033 }
0x1550   :  { %v2035_v27 = vsub.f32 %v2027_v9, %v2034_v26  ;;  %v1665_v9 = vunpack.c.l.bf16 %v1664_v6  ;;  %v2964_v26 = vld [vmem:[%s3709_s1 + $0x110] sm:$0xff]  }
0x1552   :  { %v2036_v34 = vmul.f32 1.442695, %v2035_v27 }
0x1553   :  { %v2047_v42 = vpop.permute.xlu1 %2046 }
0x1554   :  { %3031 = vpow2.f32 %v2036_v34 }
0x1557   :  { %v2139_v38 = vpop.xlane.xlu0 %2138 }
0x1558   :  { %v2140_v41 = vsub.f32 %v2132_v14, %v2139_v38 }
0x155a   :  { %v2141_v43 = vmul.f32 1.442695, %v2140_v41  ;;  %v2259_v41 = vld [vmem:[%s3709_s1 + $0x12c] sm:$0x1] }
0x155b   :  { %v1832_v17 = vpop.xlane.xlu0 %1831 }
0x155c   :  { %3033 = vpow2.f32 %v2141_v43  ;;  %v2261_v43 = vld [vmem:[%s3709_s1 + $0x130] sm:$0x1] }
0x155d   :  { %3035 = vrcp.f32 %v1832_v17  ;;  %v2260_v17 = vunpack.c.l.bf16 %v2259_v41 }
0x155f   :  { %v1943_v40 = vpop.permute.xlu0 %1942 }
0x1560   :  { %2870 = vmatpush3.bf16.msra.mxu1 %v1943_v40  ;;  %v2262_v40 = vunpack.c.l.bf16 %v2261_v43 }
0x1561   :  { %v3032_v30 = vpop.eup %3031  ;;  %2881 = vmatprep.subr.bf16.mxu1 %v3046_v1 }
0x1562   :  { %v2038_v29 = vsel %vm225_vm8, %v3032_v30, 0.0 }
0x1563   :  { %2039 = vadd.xlane.f32.xlu0 %v2038_v29 }
0x1569   :  { %v3034_v33 = vpop.eup %3033 }
0x156a   :  { %v3036_v44 = vpop.eup %3035  ;;  %v2143_v45 = vsel %vm225_vm8, %v3034_v33, 0.0 }
0x156b   :  { %2144 = vadd.xlane.f32.xlu0 %v2143_v45  ;;  %v1834_v25 = vmul.f32 %v3036_v44, %v3030_v18  ;;  %v2284_v44 = vrot.slane %v2262_v40, %v3089_v8 }
0x156d   :  { %v1835_v46 = vpack.c.bf16 %v1834_v25, %v1834_v25 }
0x156f   :  { %2872 = vmatmul.mubr.msk.bf16.vlgmr.msra.gmra.mxu1 %vm225_vm8, %v1835_v46 }
0x1570   :  { %2882 = vmatpush3.bf16.msra.mxu1 %v2047_v42  ;;  %2883 = vmatprep.mubr.msk.bf16.mxu1 %vm3047_vm0, %v3046_v1  ;;  %v2965_v42 = vld [vmem:[%s3709_s1 + $0x108] sm:$0xff]  }
0x1571   :  { %2893 = vmatprep.subr.bf16.mxu1 %v3046_v1 }
0x1581   :  { %2151 = vrot.lane.b32.xlu0 %v2149_v48, %s3051_s6  ;;  %v2966_v48 = vld [vmem:[%s3709_s1 + $0x100] sm:$0xff]  }
0x15ec   :  { %v2040_v49 = vpop.xlane.xlu0 %2039 }
0x15ed   :  { %3037 = vrcp.f32 %v2040_v49  ;;  %v2290_v49 = vld [vmem:[%s3709_s1 + $0xfc] sm:$0x1] }
0x15f4   :  { %v2145_v50 = vpop.xlane.xlu0 %2144 }
0x15f5   :  { %3039 = vrcp.f32 %v2145_v50  ;;  %v2291_v50 = vunpack.c.l.bf16 %v2290_v49 }
0x15f8   :  { %v2152_v55 = vpop.permute.xlu0 %2151 }
0x15fa   :  { %v3038_v37 = vpop.eup %3037 }
0x15fb   :  { %v2042_v53 = vmul.f32 %v3038_v37, %v3032_v30  ;;  %v2279_v30 = vrot.slane %v2260_v17, %v3089_v8  ;;  %v2306_v37 = vrot.slane %v2291_v50, %v3089_v8 }
0x15fd   :  { %v2043_v54 = vpack.c.bf16 %v2042_v53, %v2042_v53 }
0x15ff   :  { %2884 = vmatmul.mubr.msk.bf16.vlgmr.msra.gmra.mxu1 %vm225_vm8, %v2043_v54 }
0x1600   :  { %2894 = vmatpush3.bf16.msra.mxu1 %v2152_v55  ;;  %2895 = vmatprep.mubr.msk.bf16.mxu1 %vm3047_vm0, %v3046_v1 }
0x1601   :  { %2907 = vmatprep.subr.bf16.mxu1 %v3046_v1 }
0x1602   :  { %v3040_v59 = vpop.eup %3039 }
0x1603   :  { %v2147_v47 = vmul.f32 %v3040_v59, %v3034_v33 }
0x1605   :  { %v2148_v19 = vpack.c.bf16 %v2147_v47, %v2147_v47 }
0x1607   :  { %2896 = vmatmul.mubr.msk.bf16.vlgmr.msra.gmra.mxu1 %vm225_vm8, %v2148_v19 }
0x1608   :  { %2911 = vmatprep.mubr.msk.bf16.mxu1 %vm3047_vm0, %v3046_v1  ;;  %2908 = vmatpush3.bf16.msra.mxu1 %v2961_v10 }
0x1609   :  { %2909 = vmatprep.subr.bf16.mxu1 %v3046_v1 }
0x162f   :  { %v1982_v60 = vpop.f32.mrf.mxu1 }
0x1630   :  { %v1983_v0 = vadd.f32 %v1982_v60, %v3598_v23  ;;  %v2202_v23 = vrot.slane %v1665_v9, %v3089_v8 }
0x1631   :  { %v2873_v61 = vpop.f32.mrf.mxu1 }
0x1633   :  { %v1985_v36 = vpop.f32.mrf.mxu1 }
0x1635   :  { %v2874_v56 = vpop.f32.mrf.mxu1 }
0x16bf   :  { %v2086_v62 = vpop.f32.mrf.mxu1 }
0x16c0   :  { %v2092_v3 = vadd.f32 %v2086_v62, %v1983_v0 }
0x16c1   :  { %v2885_v63 = vpop.f32.mrf.mxu1 }
0x16c3   :  { %v2089_v52 = vpop.f32.mrf.mxu1 }
0x16c5   :  { %v2886_v20 = vpop.f32.mrf.mxu1 }
0x16c7   :  { %v2191_v39 = vpop.f32.mrf.mxu1 }
0x16c8   :  { %v2197_v2 = vadd.f32 %v2191_v39, %v2092_v3 }
0x16c9   :  { %v2897_v32 = vpop.f32.mrf.mxu1 }
0x16ca   :  { %v2198_v5 = vpack.c.bf16 %v2197_v2, %v2197_v2 }
0x16cb   :  { %v2194_v21 = vpop.f32.mrf.mxu1 }
0x16cc   :  { %2904 = vmatmul.mubr.msk.bf16.vlgmr.msra.gmra.mxu0 %vm125_vm1, %v2198_v5  ;;  %v2465_v5 = vld [vmem:[%s3709_s1 + $0x98] sm:$0x1] }
0x16cd   :  { %v2898_v58 = vpop.f32.mrf.mxu1  ;;  %2923 = vmatprep.mubr.msk.bf16.mxu0 %vm3047_vm0, %v3046_v1  ;;  %2916 = vmatpush3.bf16.msra.mxu0 %v2963_v24  ;;  %v2466_v21 = vunpack.c.l.bf16 %v2465_v5 }
0x16ce   :  { %2917 = vmatprep.subr.bf16.mxu0 %v3046_v1 }
0x16d1   :  { %2918 = vmatpush3.bf16.msra.mxu0 %v2964_v26 }
0x16d2   :  { %2919 = vmatprep.subr.bf16.mxu0 %v3046_v1 }
0x16d5   :  { %2920 = vmatpush3.bf16.msra.mxu0 %v2965_v42 }
0x16d6   :  { %2921 = vmatprep.subr.bf16.mxu0 %v3046_v1 }
0x16d9   :  { %2922 = vmatpush3.bf16.msra.mxu0 %v2966_v48 }
0x178c   :  { %v2252_v11 = vpop.f32.mrf.mxu0 }
0x178d   :  { %v2253_v12 = vadd.f32 %v2252_v11, %v2202_v23  ;;  %v2436_v23 = vld [vmem:[%s3709_s1 + $0x134] sm:$0x1]  ;;  %v2438_v11 = vld [vmem:[%s3709_s1 + $0x138] sm:$0x1] }
0x178e   :  { %v2905_v35 = vpop.f32.mrf.mxu0 }
0x178f   :  { %v2258_v13 = vadd.f32 %v2253_v12, %v3547_v7  ;;  %v2962_v7 = vld [vmem:[%s3709_s1 + $0xec] sm:$0xff]   ;;  %v2437_v12 = vunpack.c.l.bf16 %v2436_v23  ;;  %v2439_v35 = vunpack.c.l.bf16 %v2438_v11 }
0x1790   :  { %v2255_v28 = vpop.f32.mrf.mxu0  ;;  %2910 = vmatpush3.bf16.msra.mxu1 %v2962_v7 }
0x1791   :  { %v2263_v14 = vsel %vm125_vm1, %v2258_v13, 0.0  ;;  %2927 = vmatprep.subr.bf16.mxu1 %v3046_v1 }
0x1792   :  { %2264 = vadd.xlane.f32.xlu0 %v2263_v14  ;;  %v2906_v15 = vpop.f32.mrf.mxu0 }
0x1793   :  { %v2461_v15 = vrot.slane %v2439_v35, %v3089_v8 }
0x181b   :  { %v2265_v4 = vpop.xlane.xlu0 %2264 }
0x181c   :  { %v2266_v18 = vmul.f32 0.03125, %v2265_v4 }
0x181e   :  { %v2267_v31 = vsub.f32 %v2258_v13, %v2266_v18  ;;  %v2456_v13 = vrot.slane %v2437_v12, %v3089_v8 }
0x1820   :  { %v2268_v22 = vmul.f32 %v2267_v31, %v2267_v31 }
0x1822   :  { %v2269_v16 = vsel %vm125_vm1, %v2268_v22, 0.0 }
0x1823   :  { %2270 = vadd.xlane.f32.xlu1 %v2269_v16  ;;  %v2463_v16 = vld [vmem:[%s3709_s1 + $0x94] sm:$0x1] }
0x18ac   :  { %v2271_v27 = vpop.xlane.xlu1 %2270 }
0x18ad   :  { %v2272_v34 = vmul.f32 0.03125, %v2271_v27 }
0x18af   :  { %v2273_v38 = vadd.f32 1e-05, %v2272_v34 }
0x18b1   :  { %3041 = vrsqrt.f32 %v2273_v38 }
0x18be   :  { %v3042_v29 = vpop.eup %3041 }
0x18bf   :  { %v2275_v33 = vmul.f32 %v3042_v29, %v2267_v31 }
0x18c1   :  { %v2280_v45 = vmul.f32 %v2279_v30, %v2275_v33 }
0x18c3   :  { %v2285_v25 = vadd.f32 %v2284_v44, %v2280_v45 }
0x18c5   :  { %v2302_v46 = vpack.c.bf16 %v2285_v25, %v2285_v25 }
0x18c7   :  { %2912 = vmatmul.mubr.msk.bf16.vlgmr.msra.gmra.mxu1 %vm125_vm1, %v2302_v46 }
0x18c8   :  { %2929 = vmatprep.mubr.msk.bf16.mxu1 %vm3047_vm0, %v3046_v1  ;;  %v2300_v1 = vld [vmem:[%s3709_s1 + $0x120] sm:$0x1]  ;;  %vm2518_vm0 = vcmask 57344  }
0x18c9   :  { %v2301_v61 = vunpack.c.l.bf16 %v2300_v1 }
0x18cb   :  { %v2367_v36 = vrot.slane %v2301_v61, %v3089_v8 }
0x1987   :  { %v2356_v53 = vpop.f32.mrf.mxu1 }
0x1988   :  { %v2357_v54 = vadd.f32 %v2356_v53, %v2306_v37 }
0x1989   :  { %v2913_v55 = vpop.f32.mrf.mxu1 }
0x198a   :  { %v2362_v59 = vmax.f32 %v2357_v54, 0.0 }
0x198b   :  { %v2359_v47 = vpop.f32.mrf.mxu1 }
0x198c   :  { %v2363_v19 = vpack.c.bf16 %v2362_v59, %v2362_v59 }
0x198d   :  { %v2914_v60 = vpop.f32.mrf.mxu1 }
0x198e   :  { %2924 = vmatmul.mubr.msk.bf16.vlgmr.msra.gmra.mxu0 %vm883_vm15, %v2363_v19 }
0x1a4e   :  { %v2429_v56 = vpop.f32.mrf.mxu0 }
0x1a4f   :  { %v2430_v51 = vadd.f32 %v2429_v56, %v2367_v36 }
0x1a50   :  { %v2925_v57 = vpop.f32.mrf.mxu0 }
0x1a51   :  { %v2435_v62 = vadd.f32 %v2430_v51, %v2285_v25 }
0x1a52   :  { %v2432_v63 = vpop.f32.mrf.mxu0 }
0x1a53   :  { %v2440_v52 = vsel %vm125_vm1, %v2435_v62, 0.0 }
0x1a54   :  { %2441 = vadd.xlane.f32.xlu0 %v2440_v52  ;;  %v2926_v0 = vpop.f32.mrf.mxu0 }
0x1add   :  { %v2442_v20 = vpop.xlane.xlu0 %2441 }
0x1ade   :  { %v2443_v3 = vmul.f32 0.03125, %v2442_v20 }
0x1ae0   :  { %v2444_v39 = vsub.f32 %v2435_v62, %v2443_v3 }
0x1ae2   :  { %v2445_v2 = vmul.f32 %v2444_v39, %v2444_v39 }
0x1ae4   :  { %v2446_v32 = vsel %vm125_vm1, %v2445_v2, 0.0 }
0x1ae5   :  { %2447 = vadd.xlane.f32.xlu0 %v2446_v32 }
0x1afb   :  { %2469 = vperm.xlu0 %2939, %v2466_v21  }
0x1b6e   :  { %v2448_v58 = vpop.xlane.xlu0 %2447 }
0x1b6f   :  { %v2449_v6 = vmul.f32 0.03125, %v2448_v58 }
0x1b71   :  { %v2450_v9 = vadd.f32 1e-05, %v2449_v6 }
0x1b73   :  { %3043 = vrsqrt.f32 %v2450_v9 }
0x1b76   :  { %v2470_v10 = vpop.permute.xlu0 %2469 }
0x1b80   :  { %v3044_v28 = vpop.eup %3043 }
0x1b81   :  { %v2452_v14 = vmul.f32 %v3044_v28, %v2444_v39 }
0x1b83   :  { %v2457_v4 = vmul.f32 %v2456_v13, %v2452_v14 }
0x1b85   :  { %v2462_v18 = vadd.f32 %v2461_v15, %v2457_v4 }
0x1b87   :  { %v2464_v31 = vpack.c.bf16 %v2462_v18, %v2462_v18 }
0x1b89   :  { %v2476_v22 = vsel %vm125_vm1, %v2464_v31, 0 }
0x1b8a   :  { %2928 = vmatpush3.bf16.xpose.msra.mxu1 %v2476_v22 }
0x1b91   :  { %2930 = vmatmul.mubr.msk.bf16.vlgmr.msra.gmra.mxu1 %vm125_vm1, %v2463_v16 }
0x1c51   :  { %v2512_v7 = vpop.f32.mrf.mxu1 }
0x1c52   :  { %v2513_v24 = vadd.f32 %v2512_v7, %v2470_v10 }
0x1c53   :  { %v2931_v26 = vpop.f32.mrf.mxu1 }
0x1c54   :  { %2519 = vst.msk [vmem:[%s3711_s2] sm:$0x1] %vm2518_vm0, %v2513_v24 }
0x1c55   :  { %v2515_v8 = vpop.f32.mrf.mxu1 }
0x1c57   :  { %v2932_v27 = vpop.f32.mrf.mxu1 }

</bundles_post_ra>
